<compile_context>
chip_gen: v5e
topology: v5e:2x2
jax: 0.10.0
libtpu: 0.0.40
codegen_flags: <defaults>
</compile_context>

<pallas_src>
import functools

import jax
import jax.numpy as jnp
from jax.experimental import pallas as pl
from jax.experimental.pallas import tpu as pltpu  # noqa: F401  (TPU backend)

OUT_PAD = 128   # lane-dense head / output padding
SUBLANE = 8     # f32 sublane tile


# ---------------------------------------------------------------------------
# Fused encoder kernel (grid-less; everything resident in VMEM/vregs).
# Layout: per-position activations are flattened row-major (L*Bp, feat); the
# two directions of each recurrence share one (Bp, 2H) packed hidden state
# ([:H] = fwd/dt, [H:] = bwd/td) with per-gate block-diagonal recurrent
# weights; the 3 gates are packed along the last dim (3*2H lanes).
# ---------------------------------------------------------------------------
def encoder_kernel(
    emb_ref,    # (L*Bp, 2*Dw)   cat(word_emb, label_emb), row = t*Bp + b
    rel_ref,    # (L*Bp, Dw)     rel embedding (time-major, flattened)
    wih1_ref,   # (2*Dw, 3*2H)   biGRU input weights, gates (r,z,n) x [fwd|bwd]
    bi1_ref,    # (1, 3*2H)      b_ih with b_hh(r,z) folded in
    whh1_ref,   # (2H, 3*2H)     per-gate block_diag(fwd, bwd)
    bhn1_ref,   # (1, 2H)        b_hh(n)
    wg2_ref,    # (2H, 3*2H)     tree input weights on biGRU states (transform folded)
    wr2_ref,    # (Dw, 3*2H)     tree input weights on rel embedding
    bi2_ref,    # (1, 3*2H)      folded transform bias + b_ih + b_hh(r,z)
    whh2_ref,   # (2H, 3*2H)     per-gate block_diag(dt, td)
    bhn2_ref,   # (1, 2H)        b_hh(n)
    fcw_ref,    # (2H, 128)      fc weight, zero-padded 100 -> 128
    fcb_ref,    # (1, 128)
    fc2w_ref,   # (128, 128)     fc2 weight, zero-padded
    fc2b_ref,   # (1, 128)
    out_ref,    # (Bp, 128)      padded logits
):
    Bp = out_ref.shape[0]
    H2 = whh1_ref.shape[0]
    H = H2 // 2
    G3 = 3 * H2
    L = emb_ref.shape[0] // Bp

    # Lane masks: True on the first H lanes of each direction-packed block.
    fwd_mask3 = jax.lax.broadcasted_iota(jnp.int32, (Bp, G3), 1) % H2 < H
    fwd_mask = jax.lax.broadcasted_iota(jnp.int32, (Bp, H2), 1) < H

    def align(gi):
        # One-shot prologue (off the serial h-chain): at step t the fwd/dt
        # lanes consume position t, the bwd/td lanes consume position L-1-t.
        return [
            jnp.where(fwd_mask3,
                      gi[t * Bp:(t + 1) * Bp, :],
                      gi[(L - 1 - t) * Bp:(L - t) * Bp, :])
            for t in range(L)
        ]

    def recurrence(gi_steps, whh, bhn_b):
        # Packed bidirectional GRU (PyTorch gate order r, z, n).
        # One fused-gate (Bp,2H)@(2H,3*2H) MXU matmul per step; gate biases of
        # r/z are already folded into gi_steps, b_hh(n) stays inside the
        # reset-gated term.
        h = jnp.zeros((Bp, H2), jnp.float32)
        hs = []
        for t in range(L):
            g = gi_steps[t]
            gh = jnp.dot(h, whh, preferred_element_type=jnp.float32)
            r = jax.nn.sigmoid(g[:, 0:H2] + gh[:, 0:H2])
            z = jax.nn.sigmoid(g[:, H2:2 * H2] + gh[:, H2:2 * H2])
            n = jnp.tanh(g[:, 2 * H2:G3] + r * (gh[:, 2 * H2:G3] + bhn_b))
            h = (1.0 - z) * n + z * h
            hs.append(h)
        return hs

    emb = emb_ref[...]
    rel = rel_ref[...]

    # ---- pass 1: biGRU.  Fused-gate hoisted input projection (1 matmul). ---
    gi1 = (jnp.dot(emb, wih1_ref[...], preferred_element_type=jnp.float32)
           + bi1_ref[...])
    whh1 = whh1_ref[...]                                  # loaded once
    bhn1 = jnp.broadcast_to(bhn1_ref[...], (Bp, H2))      # broadcast once
    hs1 = recurrence(align(gi1), whh1, bhn1)

    # Position-aligned biGRU output, kept in registers (no VMEM scratch
    # round-trip): grus[p] = [fwd state at p | bwd state at p].
    grus = jnp.concatenate(
        [jnp.where(fwd_mask, hs1[p], hs1[L - 1 - p]) for p in range(L)], axis=0)

    # ---- pass 2: dt/td tree-GRU stand-ins (transform folded into wg2/bi2) --
    gi2 = (jnp.dot(grus, wg2_ref[...], preferred_element_type=jnp.float32)
           + jnp.dot(rel, wr2_ref[...], preferred_element_type=jnp.float32)
           + bi2_ref[...])
    whh2 = whh2_ref[...]
    bhn2 = jnp.broadcast_to(bhn2_ref[...], (Bp, H2))
    hs2 = recurrence(align(gi2), whh2, bhn2)

    # ---- fused head: running max over steps == max-pool over positions ----
    pooled = hs2[0]
    for t in range(1, L):
        pooled = jnp.maximum(pooled, hs2[t])              # (Bp, 2H)

    hid = (jnp.dot(pooled, fcw_ref[...], preferred_element_type=jnp.float32)
           + fcb_ref[...])
    out_ref[...] = (
        jnp.dot(hid, fc2w_ref[...], preferred_element_type=jnp.float32)
        + fc2b_ref[...])


# ---------------------------------------------------------------------------
# Weight packing — done ONCE, outside the per-call jit.
# ---------------------------------------------------------------------------
def _block_diag(a, b):
    za = jnp.zeros((a.shape[0], b.shape[1]), a.dtype)
    zb = jnp.zeros((b.shape[0], a.shape[1]), a.dtype)
    return jnp.concatenate(
        [jnp.concatenate([a, za], axis=1), jnp.concatenate([zb, b], axis=1)],
        axis=0)


def _gate(w, g, H):
    """Slice gate g (r, z, n order) out of a (..., 3H) GRU parameter."""
    return w[..., g * H:(g + 1) * H]


def pack_params(params, out_pad=OUT_PAD):
    H = params["gru_fwd"]["w_hh"].shape[0]
    Dw = params["word_emb"].shape[1]
    gf, gb = params["gru_fwd"], params["gru_bwd"]
    dt, td = params["dt_tree"], params["td_tree"]
    Wt, bt = params["transform_w"], params["transform_b"]      # (2H, Dw), (Dw,)

    wih1_g, bi1_g, whh1_g, bhh1_g = [], [], [], []
    wg2_g, wr2_g, bi2_g, whh2_g, bhh2_g = [], [], [], [], []
    for g in range(3):
        # bidirectional GRU: pack [fwd | bwd] along output lanes.
        wih1_g.append(jnp.concatenate(
            [_gate(gf["w_ih"], g, H), _gate(gb["w_ih"], g, H)], axis=1))
        bi1_g.append(jnp.concatenate(
            [_gate(gf["b_ih"], g, H), _gate(gb["b_ih"], g, H)], axis=1))
        whh1_g.append(_block_diag(_gate(gf["w_hh"], g, H), _gate(gb["w_hh"], g, H)))
        bhh1_g.append(jnp.concatenate(
            [_gate(gf["b_hh"], g, H), _gate(gb["b_hh"], g, H)], axis=1))

        # tree GRUs: fold transform(x) = x @ Wt + bt into the input projection.
        wdt, wtd = _gate(dt["w_ih"], g, H), _gate(td["w_ih"], g, H)   # (2*Dw, H)
        wg2_g.append(jnp.concatenate([Wt @ wdt[:Dw], Wt @ wtd[:Dw]], axis=1))
        wr2_g.append(jnp.concatenate([wdt[Dw:], wtd[Dw:]], axis=1))
        bi2_g.append(jnp.concatenate(
            [bt @ wdt[:Dw] + _gate(dt["b_ih"], g, H)[0],
             bt @ wtd[:Dw] + _gate(td["b_ih"], g, H)[0]], axis=0)[None, :])
        whh2_g.append(_block_diag(_gate(dt["w_hh"], g, H), _gate(td["w_hh"], g, H)))
        bhh2_g.append(jnp.concatenate(
            [_gate(dt["b_hh"], g, H), _gate(td["b_hh"], g, H)], axis=1))

    # Fuse the 3 gates along the output (lane) dim: (in, 3*2H).
    cat = lambda xs: jnp.concatenate(xs, axis=1)
    wih1, whh1 = cat(wih1_g), cat(whh1_g)
    wg2, wr2, whh2 = cat(wg2_g), cat(wr2_g), cat(whh2_g)

    # Fold b_hh of the r/z gates into the input bias; keep b_hh(n) separate
    # (it sits inside the reset-gated term).
    bi1 = jnp.concatenate(
        [bi1_g[0] + bhh1_g[0], bi1_g[1] + bhh1_g[1], bi1_g[2]], axis=1)
    bhn1 = bhh1_g[2]
    bi2 = jnp.concatenate(
        [bi2_g[0] + bhh2_g[0], bi2_g[1] + bhh2_g[1], bi2_g[2]], axis=1)
    bhn2 = bhh2_g[2]

    # head: zero-pad fc / fc2 so all head matmuls and the final store are
    # 128-lane dense (exact math, padding contributes zeros).
    fc_w, fc_b = params["fc_w"], params["fc_b"]
    fc2_w, fc2_b = params["fc2_w"], params["fc2_b"]
    fcw = jnp.pad(fc_w, ((0, 0), (0, out_pad - fc_w.shape[1])))
    fcb = jnp.pad(fc_b, (0, out_pad - fc_b.shape[0]))[None, :]
    fc2w = jnp.pad(fc2_w,
                   ((0, out_pad - fc2_w.shape[0]), (0, out_pad - fc2_w.shape[1])))
    fc2b = jnp.pad(fc2_b, (0, out_pad - fc2_b.shape[0]))[None, :]

    return dict(
        word_emb=params["word_emb"], rel_emb=params["rel_emb"],
        wih1=wih1, bi1=bi1, whh1=whh1, bhn1=bhn1,
        wg2=wg2, wr2=wr2, bi2=bi2, whh2=whh2, bhn2=bhn2,
        fcw=fcw, fcb=fcb, fc2w=fc2w, fc2b=fc2b)


# ---------------------------------------------------------------------------
# Parameter construction (deterministic, synthetic)
# ---------------------------------------------------------------------------
def make_gru_params(key, d_in, d_hid):
    k = jax.random.split(key, 4)
    return dict(
        w_ih=0.1 * jax.random.normal(k[0], (d_in, 3 * d_hid), jnp.float32),
        w_hh=0.1 * jax.random.normal(k[1], (d_hid, 3 * d_hid), jnp.float32),
        b_ih=0.1 * jax.random.normal(k[2], (1, 3 * d_hid), jnp.float32),
        b_hh=0.1 * jax.random.normal(k[3], (1, 3 * d_hid), jnp.float32),
    )


def make_params(key, word_num, rel_num, word_dims, lstm_hiddens, category_num):
    ks = jax.random.split(key, 12)
    p = {}
    p["word_emb"] = 0.1 * jax.random.normal(ks[0], (word_num, word_dims), jnp.float32)
    p["rel_emb"] = 0.1 * jax.random.normal(ks[1], (rel_num, word_dims), jnp.float32)
    # bidirectional GRU over cat(word_emb, label_emb): input 2*word_dims
    p["gru_fwd"] = make_gru_params(ks[2], 2 * word_dims, lstm_hiddens)
    p["gru_bwd"] = make_gru_params(ks[3], 2 * word_dims, lstm_hiddens)
    # transform: Linear(2*lstm_hiddens -> word_dims)
    p["transform_w"] = 0.1 * jax.random.normal(ks[4], (2 * lstm_hiddens, word_dims), jnp.float32)
    p["transform_b"] = 0.1 * jax.random.normal(ks[5], (word_dims,), jnp.float32)
    # tree GRU stand-ins: input 2*word_dims -> lstm_hiddens
    p["dt_tree"] = make_gru_params(ks[6], 2 * word_dims, lstm_hiddens)
    p["td_tree"] = make_gru_params(ks[7], 2 * word_dims, lstm_hiddens)
    # fc: Linear(2*lstm_hiddens -> 100), fc2: Linear(100 -> category_num)
    p["fc_w"] = 0.1 * jax.random.normal(ks[8], (2 * lstm_hiddens, 100), jnp.float32)
    p["fc_b"] = 0.1 * jax.random.normal(ks[9], (100,), jnp.float32)
    p["fc2_w"] = 0.1 * jax.random.normal(ks[10], (100, category_num), jnp.float32)
    p["fc2_b"] = 0.1 * jax.random.normal(ks[11], (category_num,), jnp.float32)
    return p


# ---------------------------------------------------------------------------
# Encoder.forward (takes the pre-packed weights; packing happens once outside)
# ---------------------------------------------------------------------------
@functools.partial(jax.jit, static_argnames=("category_num",))
def encoder_forward(packed, xs, rels, labels, *, category_num):
    B, L = xs.shape
    Dw = packed["word_emb"].shape[1]
    Bp = ((B + SUBLANE - 1) // SUBLANE) * SUBLANE   # pad batch to a sublane tile

    # ---- embedding lookups, gathered directly in time-major order --------
    word_emb = packed["word_emb"][xs.T]        # (L, B, Dw)
    label_emb = packed["word_emb"][labels.T]   # module uses self.embedding(labels)
    rel_emb = packed["rel_emb"][rels.T]        # (L, B, Dw)

    pad = Bp - B
    emb = jnp.pad(jnp.concatenate([word_emb, label_emb], axis=-1),
                  ((0, 0), (0, pad), (0, 0)))
    rel = jnp.pad(rel_emb, ((0, 0), (0, pad), (0, 0)))
    emb2d = emb.reshape(L * Bp, 2 * Dw)
    rel2d = rel.reshape(L * Bp, Dw)

    # TODO(synk): on v7x with a large batch, add a leading batch grid axis with
    # dimension_semantics=("parallel",) to occupy both TensorCores; at B=2 a
    # grid-less call is the right shape.
    out_pad = pl.pallas_call(
        encoder_kernel,
        out_shape=jax.ShapeDtypeStruct((Bp, OUT_PAD), jnp.float32),
    )(emb2d, rel2d,
      packed["wih1"], packed["bi1"], packed["whh1"], packed["bhn1"],
      packed["wg2"], packed["wr2"], packed["bi2"], packed["whh2"], packed["bhn2"],
      packed["fcw"], packed["fcb"], packed["fc2w"], packed["fc2b"])

    return out_pad[:B, :category_num]           # (B, category_num)


if __name__ == "__main__":
    # small, module-consistent sizes
    B, L = 2, 8
    word_dims = 32
    lstm_hiddens = 32
    word_num = 50
    rel_num = 10
    category_num = 5

    key = jax.random.PRNGKey(0)
    kp, kx, kl, kr = jax.random.split(key, 4)

    params = make_params(kp, word_num, rel_num, word_dims, lstm_hiddens, category_num)
    packed = pack_params(params)               # one-off packing, outside the jit
    packed = jax.tree_util.tree_map(jax.block_until_ready, packed)

    xs = jax.random.randint(kx, (B, L), 0, word_num, dtype=jnp.int32)
    labels = jax.random.randint(kl, (B, L), 0, word_num, dtype=jnp.int32)
    rels = jax.random.randint(kr, (B, L), 0, rel_num, dtype=jnp.int32)

    out = encoder_forward(packed, xs, rels, labels, category_num=category_num)
    out = jax.block_until_ready(out)
    assert out.shape == (B, category_num), out.shape
    print("KERNEL_OK")
</pallas_src>

<mosaic_0001>
module attributes {stable_mosaic.version = 11 : i64} {
  func.func @encoder_kernel(%arg0: memref<64x64xf32, #tpu.memory_space<vmem>>, %arg1: memref<64x32xf32, #tpu.memory_space<vmem>>, %arg2: memref<64x192xf32, #tpu.memory_space<vmem>>, %arg3: memref<1x192xf32, #tpu.memory_space<vmem>>, %arg4: memref<64x192xf32, #tpu.memory_space<vmem>>, %arg5: memref<1x64xf32, #tpu.memory_space<vmem>>, %arg6: memref<64x192xf32, #tpu.memory_space<vmem>>, %arg7: memref<32x192xf32, #tpu.memory_space<vmem>>, %arg8: memref<1x192xf32, #tpu.memory_space<vmem>>, %arg9: memref<64x192xf32, #tpu.memory_space<vmem>>, %arg10: memref<1x64xf32, #tpu.memory_space<vmem>>, %arg11: memref<64x128xf32, #tpu.memory_space<vmem>>, %arg12: memref<1x128xf32, #tpu.memory_space<vmem>>, %arg13: memref<128x128xf32, #tpu.memory_space<vmem>>, %arg14: memref<1x128xf32, #tpu.memory_space<vmem>>, %arg15: memref<8x128xf32, #tpu.memory_space<vmem>>) attributes {dimension_semantics = [], scalar_prefetch = 0 : i64, scratch_operands = 0 : i64, tpu.core_type = #tpu.core_type<tc>} {
    %0 = tpu.iota {dimensions = array<i32: 1>} : vector<8x192xi32>
    %c64_i32 = arith.constant 64 : i32
    %c0_i32 = arith.constant 0 : i32
    %1 = arith.cmpi eq, %c64_i32, %c0_i32 : i32
    %c1_i32 = arith.constant 1 : i32
    %2 = arith.select %1, %c1_i32, %c64_i32 : i32
    %3 = vector.broadcast %2 : i32 to vector<8x192xi32>
    %4 = arith.remsi %0, %3 : vector<8x192xi32>
    %c0_i32_0 = arith.constant 0 : i32
    %5 = vector.broadcast %c0_i32_0 : i32 to vector<8x192xi32>
    %6 = arith.cmpi ne, %4, %5 : vector<8x192xi32>
    %c0_i32_1 = arith.constant 0 : i32
    %7 = vector.broadcast %c0_i32_1 : i32 to vector<8x192xi32>
    %8 = arith.cmpi slt, %4, %7 : vector<8x192xi32>
    %c0_i32_2 = arith.constant 0 : i32
    %9 = arith.cmpi slt, %2, %c0_i32_2 : i32
    %10 = vector.broadcast %9 : i1 to vector<8x192xi1>
    %11 = vector.broadcast %10 : vector<8x192xi1> to vector<8x192xi1>
    %12 = arith.xori %8, %11 : vector<8x192xi1>
    %13 = arith.andi %12, %6 : vector<8x192xi1>
    %14 = vector.broadcast %2 : i32 to vector<8x192xi32>
    %15 = arith.addi %4, %14 : vector<8x192xi32>
    %16 = arith.select %13, %15, %4 : vector<8x192xi1>, vector<8x192xi32>
    %c32_i32 = arith.constant 32 : i32
    %17 = vector.broadcast %c32_i32 : i32 to vector<8x192xi32>
    %18 = arith.cmpi slt, %16, %17 : vector<8x192xi32>
    %19 = tpu.iota {dimensions = array<i32: 1>} : vector<8x64xi32>
    %c32_i32_3 = arith.constant 32 : i32
    %20 = vector.broadcast %c32_i32_3 : i32 to vector<8x64xi32>
    %21 = arith.cmpi slt, %19, %20 : vector<8x64xi32>
    %c0 = arith.constant 0 : index
    %c0_4 = arith.constant 0 : index
    %22 = vector.load %arg0[%c0, %c0_4] : memref<64x64xf32, #tpu.memory_space<vmem>>, vector<64x64xf32>
    %c0_5 = arith.constant 0 : index
    %c0_6 = arith.constant 0 : index
    %23 = vector.load %arg1[%c0_5, %c0_6] : memref<64x32xf32, #tpu.memory_space<vmem>>, vector<64x32xf32>
    %c0_7 = arith.constant 0 : index
    %c0_8 = arith.constant 0 : index
    %24 = vector.load %arg2[%c0_7, %c0_8] : memref<64x192xf32, #tpu.memory_space<vmem>>, vector<64x192xf32>
    %cst = arith.constant dense<0.000000e+00> : vector<64x192xf32>
    %25 = tpu.matmul %22, %24, %cst {dimension_numbers = #tpu.dot_dimension_numbers<[1], [0], [0], [1], [0, 0, 1, 1], [], []>} : vector<64x64xf32>, vector<64x192xf32>, vector<64x192xf32> -> vector<64x192xf32>
    %c0_9 = arith.constant 0 : index
    %c0_10 = arith.constant 0 : index
    %26 = vector.load %arg3[%c0_9, %c0_10] : memref<1x192xf32, #tpu.memory_space<vmem>>, vector<1x192xf32>
    %27 = vector.broadcast %26 : vector<1x192xf32> to vector<64x192xf32>
    %28 = arith.addf %25, %27 : vector<64x192xf32>
    %c0_11 = arith.constant 0 : index
    %c0_12 = arith.constant 0 : index
    %29 = vector.load %arg4[%c0_11, %c0_12] : memref<64x192xf32, #tpu.memory_space<vmem>>, vector<64x192xf32>
    %c0_13 = arith.constant 0 : index
    %c0_14 = arith.constant 0 : index
    %30 = vector.load %arg5[%c0_13, %c0_14] : memref<1x64xf32, #tpu.memory_space<vmem>>, vector<1x64xf32>
    %31 = vector.shape_cast %30 : vector<1x64xf32> to vector<1x64xf32>
    %32 = vector.broadcast %31 : vector<1x64xf32> to vector<8x64xf32>
    %33 = vector.extract_strided_slice %28 {offsets = [0, 0], sizes = [8, 192], strides = [1, 1]} : vector<64x192xf32> to vector<8x192xf32>
    %34 = vector.extract_strided_slice %28 {offsets = [56, 0], sizes = [8, 192], strides = [1, 1]} : vector<64x192xf32> to vector<8x192xf32>
    %35 = arith.select %18, %33, %34 : vector<8x192xi1>, vector<8x192xf32>
    %36 = vector.extract_strided_slice %28 {offsets = [8, 0], sizes = [8, 192], strides = [1, 1]} : vector<64x192xf32> to vector<8x192xf32>
    %37 = vector.extract_strided_slice %28 {offsets = [48, 0], sizes = [8, 192], strides = [1, 1]} : vector<64x192xf32> to vector<8x192xf32>
    %38 = arith.select %18, %36, %37 : vector<8x192xi1>, vector<8x192xf32>
    %39 = vector.extract_strided_slice %28 {offsets = [16, 0], sizes = [8, 192], strides = [1, 1]} : vector<64x192xf32> to vector<8x192xf32>
    %40 = vector.extract_strided_slice %28 {offsets = [40, 0], sizes = [8, 192], strides = [1, 1]} : vector<64x192xf32> to vector<8x192xf32>
    %41 = arith.select %18, %39, %40 : vector<8x192xi1>, vector<8x192xf32>
    %42 = vector.extract_strided_slice %28 {offsets = [24, 0], sizes = [8, 192], strides = [1, 1]} : vector<64x192xf32> to vector<8x192xf32>
    %43 = vector.extract_strided_slice %28 {offsets = [32, 0], sizes = [8, 192], strides = [1, 1]} : vector<64x192xf32> to vector<8x192xf32>
    %44 = arith.select %18, %42, %43 : vector<8x192xi1>, vector<8x192xf32>
    %45 = vector.extract_strided_slice %28 {offsets = [32, 0], sizes = [8, 192], strides = [1, 1]} : vector<64x192xf32> to vector<8x192xf32>
    %46 = vector.extract_strided_slice %28 {offsets = [24, 0], sizes = [8, 192], strides = [1, 1]} : vector<64x192xf32> to vector<8x192xf32>
    %47 = arith.select %18, %45, %46 : vector<8x192xi1>, vector<8x192xf32>
    %48 = vector.extract_strided_slice %28 {offsets = [40, 0], sizes = [8, 192], strides = [1, 1]} : vector<64x192xf32> to vector<8x192xf32>
    %49 = vector.extract_strided_slice %28 {offsets = [16, 0], sizes = [8, 192], strides = [1, 1]} : vector<64x192xf32> to vector<8x192xf32>
    %50 = arith.select %18, %48, %49 : vector<8x192xi1>, vector<8x192xf32>
    %51 = vector.extract_strided_slice %28 {offsets = [48, 0], sizes = [8, 192], strides = [1, 1]} : vector<64x192xf32> to vector<8x192xf32>
    %52 = vector.extract_strided_slice %28 {offsets = [8, 0], sizes = [8, 192], strides = [1, 1]} : vector<64x192xf32> to vector<8x192xf32>
    %53 = arith.select %18, %51, %52 : vector<8x192xi1>, vector<8x192xf32>
    %54 = vector.extract_strided_slice %28 {offsets = [56, 0], sizes = [8, 192], strides = [1, 1]} : vector<64x192xf32> to vector<8x192xf32>
    %55 = vector.extract_strided_slice %28 {offsets = [0, 0], sizes = [8, 192], strides = [1, 1]} : vector<64x192xf32> to vector<8x192xf32>
    %56 = arith.select %18, %54, %55 : vector<8x192xi1>, vector<8x192xf32>
    %cst_15 = arith.constant 0.000000e+00 : f32
    %57 = vector.broadcast %cst_15 : f32 to vector<8x64xf32>
    %cst_16 = arith.constant dense<0.000000e+00> : vector<8x192xf32>
    %58 = tpu.matmul %57, %29, %cst_16 {dimension_numbers = #tpu.dot_dimension_numbers<[1], [0], [0], [1], [0, 0, 1, 1], [], []>} : vector<8x64xf32>, vector<64x192xf32>, vector<8x192xf32> -> vector<8x192xf32>
    %59 = vector.extract_strided_slice %35 {offsets = [0, 0], sizes = [8, 64], strides = [1, 1]} : vector<8x192xf32> to vector<8x64xf32>
    %60 = vector.extract_strided_slice %58 {offsets = [0, 0], sizes = [8, 64], strides = [1, 1]} : vector<8x192xf32> to vector<8x64xf32>
    %61 = arith.addf %59, %60 : vector<8x64xf32>
    %62 = arith.negf %61 : vector<8x64xf32>
    %63 = math.exp %62 : vector<8x64xf32>
    %cst_17 = arith.constant 1.000000e+00 : f32
    %64 = vector.broadcast %cst_17 : f32 to vector<8x64xf32>
    %65 = arith.addf %64, %63 : vector<8x64xf32>
    %66 = arith.divf %64, %65 : vector<8x64xf32>
    %67 = vector.extract_strided_slice %35 {offsets = [0, 64], sizes = [8, 64], strides = [1, 1]} : vector<8x192xf32> to vector<8x64xf32>
    %68 = vector.extract_strided_slice %58 {offsets = [0, 64], sizes = [8, 64], strides = [1, 1]} : vector<8x192xf32> to vector<8x64xf32>
    %69 = arith.addf %67, %68 : vector<8x64xf32>
    %70 = arith.negf %69 : vector<8x64xf32>
    %71 = math.exp %70 : vector<8x64xf32>
    %cst_18 = arith.constant 1.000000e+00 : f32
    %72 = vector.broadcast %cst_18 : f32 to vector<8x64xf32>
    %73 = arith.addf %72, %71 : vector<8x64xf32>
    %74 = arith.divf %72, %73 : vector<8x64xf32>
    %75 = vector.extract_strided_slice %35 {offsets = [0, 128], sizes = [8, 64], strides = [1, 1]} : vector<8x192xf32> to vector<8x64xf32>
    %76 = vector.extract_strided_slice %58 {offsets = [0, 128], sizes = [8, 64], strides = [1, 1]} : vector<8x192xf32> to vector<8x64xf32>
    %77 = arith.addf %76, %32 : vector<8x64xf32>
    %78 = arith.mulf %66, %77 : vector<8x64xf32>
    %79 = arith.addf %75, %78 : vector<8x64xf32>
    %80 = math.tanh %79 : vector<8x64xf32>
    %cst_19 = arith.constant 1.000000e+00 : f32
    %81 = vector.broadcast %cst_19 : f32 to vector<8x64xf32>
    %82 = arith.subf %81, %74 : vector<8x64xf32>
    %83 = arith.mulf %82, %80 : vector<8x64xf32>
    %84 = arith.mulf %74, %57 : vector<8x64xf32>
    %85 = arith.addf %83, %84 : vector<8x64xf32>
    %cst_20 = arith.constant dense<0.000000e+00> : vector<8x192xf32>
    %86 = tpu.matmul %85, %29, %cst_20 {dimension_numbers = #tpu.dot_dimension_numbers<[1], [0], [0], [1], [0, 0, 1, 1], [], []>} : vector<8x64xf32>, vector<64x192xf32>, vector<8x192xf32> -> vector<8x192xf32>
    %87 = vector.extract_strided_slice %38 {offsets = [0, 0], sizes = [8, 64], strides = [1, 1]} : vector<8x192xf32> to vector<8x64xf32>
    %88 = vector.extract_strided_slice %86 {offsets = [0, 0], sizes = [8, 64], strides = [1, 1]} : vector<8x192xf32> to vector<8x64xf32>
    %89 = arith.addf %87, %88 : vector<8x64xf32>
    %90 = arith.negf %89 : vector<8x64xf32>
    %91 = math.exp %90 : vector<8x64xf32>
    %cst_21 = arith.constant 1.000000e+00 : f32
    %92 = vector.broadcast %cst_21 : f32 to vector<8x64xf32>
    %93 = arith.addf %92, %91 : vector<8x64xf32>
    %94 = arith.divf %92, %93 : vector<8x64xf32>
    %95 = vector.extract_strided_slice %38 {offsets = [0, 64], sizes = [8, 64], strides = [1, 1]} : vector<8x192xf32> to vector<8x64xf32>
    %96 = vector.extract_strided_slice %86 {offsets = [0, 64], sizes = [8, 64], strides = [1, 1]} : vector<8x192xf32> to vector<8x64xf32>
    %97 = arith.addf %95, %96 : vector<8x64xf32>
    %98 = arith.negf %97 : vector<8x64xf32>
    %99 = math.exp %98 : vector<8x64xf32>
    %cst_22 = arith.constant 1.000000e+00 : f32
    %100 = vector.broadcast %cst_22 : f32 to vector<8x64xf32>
    %101 = arith.addf %100, %99 : vector<8x64xf32>
    %102 = arith.divf %100, %101 : vector<8x64xf32>
    %103 = vector.extract_strided_slice %38 {offsets = [0, 128], sizes = [8, 64], strides = [1, 1]} : vector<8x192xf32> to vector<8x64xf32>
    %104 = vector.extract_strided_slice %86 {offsets = [0, 128], sizes = [8, 64], strides = [1, 1]} : vector<8x192xf32> to vector<8x64xf32>
    %105 = arith.addf %104, %32 : vector<8x64xf32>
    %106 = arith.mulf %94, %105 : vector<8x64xf32>
    %107 = arith.addf %103, %106 : vector<8x64xf32>
    %108 = math.tanh %107 : vector<8x64xf32>
    %cst_23 = arith.constant 1.000000e+00 : f32
    %109 = vector.broadcast %cst_23 : f32 to vector<8x64xf32>
    %110 = arith.subf %109, %102 : vector<8x64xf32>
    %111 = arith.mulf %110, %108 : vector<8x64xf32>
    %112 = arith.mulf %102, %85 : vector<8x64xf32>
    %113 = arith.addf %111, %112 : vector<8x64xf32>
    %cst_24 = arith.constant dense<0.000000e+00> : vector<8x192xf32>
    %114 = tpu.matmul %113, %29, %cst_24 {dimension_numbers = #tpu.dot_dimension_numbers<[1], [0], [0], [1], [0, 0, 1, 1], [], []>} : vector<8x64xf32>, vector<64x192xf32>, vector<8x192xf32> -> vector<8x192xf32>
    %115 = vector.extract_strided_slice %41 {offsets = [0, 0], sizes = [8, 64], strides = [1, 1]} : vector<8x192xf32> to vector<8x64xf32>
    %116 = vector.extract_strided_slice %114 {offsets = [0, 0], sizes = [8, 64], strides = [1, 1]} : vector<8x192xf32> to vector<8x64xf32>
    %117 = arith.addf %115, %116 : vector<8x64xf32>
    %118 = arith.negf %117 : vector<8x64xf32>
    %119 = math.exp %118 : vector<8x64xf32>
    %cst_25 = arith.constant 1.000000e+00 : f32
    %120 = vector.broadcast %cst_25 : f32 to vector<8x64xf32>
    %121 = arith.addf %120, %119 : vector<8x64xf32>
    %122 = arith.divf %120, %121 : vector<8x64xf32>
    %123 = vector.extract_strided_slice %41 {offsets = [0, 64], sizes = [8, 64], strides = [1, 1]} : vector<8x192xf32> to vector<8x64xf32>
    %124 = vector.extract_strided_slice %114 {offsets = [0, 64], sizes = [8, 64], strides = [1, 1]} : vector<8x192xf32> to vector<8x64xf32>
    %125 = arith.addf %123, %124 : vector<8x64xf32>
    %126 = arith.negf %125 : vector<8x64xf32>
    %127 = math.exp %126 : vector<8x64xf32>
    %cst_26 = arith.constant 1.000000e+00 : f32
    %128 = vector.broadcast %cst_26 : f32 to vector<8x64xf32>
    %129 = arith.addf %128, %127 : vector<8x64xf32>
    %130 = arith.divf %128, %129 : vector<8x64xf32>
    %131 = vector.extract_strided_slice %41 {offsets = [0, 128], sizes = [8, 64], strides = [1, 1]} : vector<8x192xf32> to vector<8x64xf32>
    %132 = vector.extract_strided_slice %114 {offsets = [0, 128], sizes = [8, 64], strides = [1, 1]} : vector<8x192xf32> to vector<8x64xf32>
    %133 = arith.addf %132, %32 : vector<8x64xf32>
    %134 = arith.mulf %122, %133 : vector<8x64xf32>
    %135 = arith.addf %131, %134 : vector<8x64xf32>
    %136 = math.tanh %135 : vector<8x64xf32>
    %cst_27 = arith.constant 1.000000e+00 : f32
    %137 = vector.broadcast %cst_27 : f32 to vector<8x64xf32>
    %138 = arith.subf %137, %130 : vector<8x64xf32>
    %139 = arith.mulf %138, %136 : vector<8x64xf32>
    %140 = arith.mulf %130, %113 : vector<8x64xf32>
    %141 = arith.addf %139, %140 : vector<8x64xf32>
    %cst_28 = arith.constant dense<0.000000e+00> : vector<8x192xf32>
    %142 = tpu.matmul %141, %29, %cst_28 {dimension_numbers = #tpu.dot_dimension_numbers<[1], [0], [0], [1], [0, 0, 1, 1], [], []>} : vector<8x64xf32>, vector<64x192xf32>, vector<8x192xf32> -> vector<8x192xf32>
    %143 = vector.extract_strided_slice %44 {offsets = [0, 0], sizes = [8, 64], strides = [1, 1]} : vector<8x192xf32> to vector<8x64xf32>
    %144 = vector.extract_strided_slice %142 {offsets = [0, 0], sizes = [8, 64], strides = [1, 1]} : vector<8x192xf32> to vector<8x64xf32>
    %145 = arith.addf %143, %144 : vector<8x64xf32>
    %146 = arith.negf %145 : vector<8x64xf32>
    %147 = math.exp %146 : vector<8x64xf32>
    %cst_29 = arith.constant 1.000000e+00 : f32
    %148 = vector.broadcast %cst_29 : f32 to vector<8x64xf32>
    %149 = arith.addf %148, %147 : vector<8x64xf32>
    %150 = arith.divf %148, %149 : vector<8x64xf32>
    %151 = vector.extract_strided_slice %44 {offsets = [0, 64], sizes = [8, 64], strides = [1, 1]} : vector<8x192xf32> to vector<8x64xf32>
    %152 = vector.extract_strided_slice %142 {offsets = [0, 64], sizes = [8, 64], strides = [1, 1]} : vector<8x192xf32> to vector<8x64xf32>
    %153 = arith.addf %151, %152 : vector<8x64xf32>
    %154 = arith.negf %153 : vector<8x64xf32>
    %155 = math.exp %154 : vector<8x64xf32>
    %cst_30 = arith.constant 1.000000e+00 : f32
    %156 = vector.broadcast %cst_30 : f32 to vector<8x64xf32>
    %157 = arith.addf %156, %155 : vector<8x64xf32>
    %158 = arith.divf %156, %157 : vector<8x64xf32>
    %159 = vector.extract_strided_slice %44 {offsets = [0, 128], sizes = [8, 64], strides = [1, 1]} : vector<8x192xf32> to vector<8x64xf32>
    %160 = vector.extract_strided_slice %142 {offsets = [0, 128], sizes = [8, 64], strides = [1, 1]} : vector<8x192xf32> to vector<8x64xf32>
    %161 = arith.addf %160, %32 : vector<8x64xf32>
    %162 = arith.mulf %150, %161 : vector<8x64xf32>
    %163 = arith.addf %159, %162 : vector<8x64xf32>
    %164 = math.tanh %163 : vector<8x64xf32>
    %cst_31 = arith.constant 1.000000e+00 : f32
    %165 = vector.broadcast %cst_31 : f32 to vector<8x64xf32>
    %166 = arith.subf %165, %158 : vector<8x64xf32>
    %167 = arith.mulf %166, %164 : vector<8x64xf32>
    %168 = arith.mulf %158, %141 : vector<8x64xf32>
    %169 = arith.addf %167, %168 : vector<8x64xf32>
    %cst_32 = arith.constant dense<0.000000e+00> : vector<8x192xf32>
    %170 = tpu.matmul %169, %29, %cst_32 {dimension_numbers = #tpu.dot_dimension_numbers<[1], [0], [0], [1], [0, 0, 1, 1], [], []>} : vector<8x64xf32>, vector<64x192xf32>, vector<8x192xf32> -> vector<8x192xf32>
    %171 = vector.extract_strided_slice %47 {offsets = [0, 0], sizes = [8, 64], strides = [1, 1]} : vector<8x192xf32> to vector<8x64xf32>
    %172 = vector.extract_strided_slice %170 {offsets = [0, 0], sizes = [8, 64], strides = [1, 1]} : vector<8x192xf32> to vector<8x64xf32>
    %173 = arith.addf %171, %172 : vector<8x64xf32>
    %174 = arith.negf %173 : vector<8x64xf32>
    %175 = math.exp %174 : vector<8x64xf32>
    %cst_33 = arith.constant 1.000000e+00 : f32
    %176 = vector.broadcast %cst_33 : f32 to vector<8x64xf32>
    %177 = arith.addf %176, %175 : vector<8x64xf32>
    %178 = arith.divf %176, %177 : vector<8x64xf32>
    %179 = vector.extract_strided_slice %47 {offsets = [0, 64], sizes = [8, 64], strides = [1, 1]} : vector<8x192xf32> to vector<8x64xf32>
    %180 = vector.extract_strided_slice %170 {offsets = [0, 64], sizes = [8, 64], strides = [1, 1]} : vector<8x192xf32> to vector<8x64xf32>
    %181 = arith.addf %179, %180 : vector<8x64xf32>
    %182 = arith.negf %181 : vector<8x64xf32>
    %183 = math.exp %182 : vector<8x64xf32>
    %cst_34 = arith.constant 1.000000e+00 : f32
    %184 = vector.broadcast %cst_34 : f32 to vector<8x64xf32>
    %185 = arith.addf %184, %183 : vector<8x64xf32>
    %186 = arith.divf %184, %185 : vector<8x64xf32>
    %187 = vector.extract_strided_slice %47 {offsets = [0, 128], sizes = [8, 64], strides = [1, 1]} : vector<8x192xf32> to vector<8x64xf32>
    %188 = vector.extract_strided_slice %170 {offsets = [0, 128], sizes = [8, 64], strides = [1, 1]} : vector<8x192xf32> to vector<8x64xf32>
    %189 = arith.addf %188, %32 : vector<8x64xf32>
    %190 = arith.mulf %178, %189 : vector<8x64xf32>
    %191 = arith.addf %187, %190 : vector<8x64xf32>
    %192 = math.tanh %191 : vector<8x64xf32>
    %cst_35 = arith.constant 1.000000e+00 : f32
    %193 = vector.broadcast %cst_35 : f32 to vector<8x64xf32>
    %194 = arith.subf %193, %186 : vector<8x64xf32>
    %195 = arith.mulf %194, %192 : vector<8x64xf32>
    %196 = arith.mulf %186, %169 : vector<8x64xf32>
    %197 = arith.addf %195, %196 : vector<8x64xf32>
    %cst_36 = arith.constant dense<0.000000e+00> : vector<8x192xf32>
    %198 = tpu.matmul %197, %29, %cst_36 {dimension_numbers = #tpu.dot_dimension_numbers<[1], [0], [0], [1], [0, 0, 1, 1], [], []>} : vector<8x64xf32>, vector<64x192xf32>, vector<8x192xf32> -> vector<8x192xf32>
    %199 = vector.extract_strided_slice %50 {offsets = [0, 0], sizes = [8, 64], strides = [1, 1]} : vector<8x192xf32> to vector<8x64xf32>
    %200 = vector.extract_strided_slice %198 {offsets = [0, 0], sizes = [8, 64], strides = [1, 1]} : vector<8x192xf32> to vector<8x64xf32>
    %201 = arith.addf %199, %200 : vector<8x64xf32>
    %202 = arith.negf %201 : vector<8x64xf32>
    %203 = math.exp %202 : vector<8x64xf32>
    %cst_37 = arith.constant 1.000000e+00 : f32
    %204 = vector.broadcast %cst_37 : f32 to vector<8x64xf32>
    %205 = arith.addf %204, %203 : vector<8x64xf32>
    %206 = arith.divf %204, %205 : vector<8x64xf32>
    %207 = vector.extract_strided_slice %50 {offsets = [0, 64], sizes = [8, 64], strides = [1, 1]} : vector<8x192xf32> to vector<8x64xf32>
    %208 = vector.extract_strided_slice %198 {offsets = [0, 64], sizes = [8, 64], strides = [1, 1]} : vector<8x192xf32> to vector<8x64xf32>
    %209 = arith.addf %207, %208 : vector<8x64xf32>
    %210 = arith.negf %209 : vector<8x64xf32>
    %211 = math.exp %210 : vector<8x64xf32>
    %cst_38 = arith.constant 1.000000e+00 : f32
    %212 = vector.broadcast %cst_38 : f32 to vector<8x64xf32>
    %213 = arith.addf %212, %211 : vector<8x64xf32>
    %214 = arith.divf %212, %213 : vector<8x64xf32>
    %215 = vector.extract_strided_slice %50 {offsets = [0, 128], sizes = [8, 64], strides = [1, 1]} : vector<8x192xf32> to vector<8x64xf32>
    %216 = vector.extract_strided_slice %198 {offsets = [0, 128], sizes = [8, 64], strides = [1, 1]} : vector<8x192xf32> to vector<8x64xf32>
    %217 = arith.addf %216, %32 : vector<8x64xf32>
    %218 = arith.mulf %206, %217 : vector<8x64xf32>
    %219 = arith.addf %215, %218 : vector<8x64xf32>
    %220 = math.tanh %219 : vector<8x64xf32>
    %cst_39 = arith.constant 1.000000e+00 : f32
    %221 = vector.broadcast %cst_39 : f32 to vector<8x64xf32>
    %222 = arith.subf %221, %214 : vector<8x64xf32>
    %223 = arith.mulf %222, %220 : vector<8x64xf32>
    %224 = arith.mulf %214, %197 : vector<8x64xf32>
    %225 = arith.addf %223, %224 : vector<8x64xf32>
    %cst_40 = arith.constant dense<0.000000e+00> : vector<8x192xf32>
    %226 = tpu.matmul %225, %29, %cst_40 {dimension_numbers = #tpu.dot_dimension_numbers<[1], [0], [0], [1], [0, 0, 1, 1], [], []>} : vector<8x64xf32>, vector<64x192xf32>, vector<8x192xf32> -> vector<8x192xf32>
    %227 = vector.extract_strided_slice %53 {offsets = [0, 0], sizes = [8, 64], strides = [1, 1]} : vector<8x192xf32> to vector<8x64xf32>
    %228 = vector.extract_strided_slice %226 {offsets = [0, 0], sizes = [8, 64], strides = [1, 1]} : vector<8x192xf32> to vector<8x64xf32>
    %229 = arith.addf %227, %228 : vector<8x64xf32>
    %230 = arith.negf %229 : vector<8x64xf32>
    %231 = math.exp %230 : vector<8x64xf32>
    %cst_41 = arith.constant 1.000000e+00 : f32
    %232 = vector.broadcast %cst_41 : f32 to vector<8x64xf32>
    %233 = arith.addf %232, %231 : vector<8x64xf32>
    %234 = arith.divf %232, %233 : vector<8x64xf32>
    %235 = vector.extract_strided_slice %53 {offsets = [0, 64], sizes = [8, 64], strides = [1, 1]} : vector<8x192xf32> to vector<8x64xf32>
    %236 = vector.extract_strided_slice %226 {offsets = [0, 64], sizes = [8, 64], strides = [1, 1]} : vector<8x192xf32> to vector<8x64xf32>
    %237 = arith.addf %235, %236 : vector<8x64xf32>
    %238 = arith.negf %237 : vector<8x64xf32>
    %239 = math.exp %238 : vector<8x64xf32>
    %cst_42 = arith.constant 1.000000e+00 : f32
    %240 = vector.broadcast %cst_42 : f32 to vector<8x64xf32>
    %241 = arith.addf %240, %239 : vector<8x64xf32>
    %242 = arith.divf %240, %241 : vector<8x64xf32>
    %243 = vector.extract_strided_slice %53 {offsets = [0, 128], sizes = [8, 64], strides = [1, 1]} : vector<8x192xf32> to vector<8x64xf32>
    %244 = vector.extract_strided_slice %226 {offsets = [0, 128], sizes = [8, 64], strides = [1, 1]} : vector<8x192xf32> to vector<8x64xf32>
    %245 = arith.addf %244, %32 : vector<8x64xf32>
    %246 = arith.mulf %234, %245 : vector<8x64xf32>
    %247 = arith.addf %243, %246 : vector<8x64xf32>
    %248 = math.tanh %247 : vector<8x64xf32>
    %cst_43 = arith.constant 1.000000e+00 : f32
    %249 = vector.broadcast %cst_43 : f32 to vector<8x64xf32>
    %250 = arith.subf %249, %242 : vector<8x64xf32>
    %251 = arith.mulf %250, %248 : vector<8x64xf32>
    %252 = arith.mulf %242, %225 : vector<8x64xf32>
    %253 = arith.addf %251, %252 : vector<8x64xf32>
    %cst_44 = arith.constant dense<0.000000e+00> : vector<8x192xf32>
    %254 = tpu.matmul %253, %29, %cst_44 {dimension_numbers = #tpu.dot_dimension_numbers<[1], [0], [0], [1], [0, 0, 1, 1], [], []>} : vector<8x64xf32>, vector<64x192xf32>, vector<8x192xf32> -> vector<8x192xf32>
    %255 = vector.extract_strided_slice %56 {offsets = [0, 0], sizes = [8, 64], strides = [1, 1]} : vector<8x192xf32> to vector<8x64xf32>
    %256 = vector.extract_strided_slice %254 {offsets = [0, 0], sizes = [8, 64], strides = [1, 1]} : vector<8x192xf32> to vector<8x64xf32>
    %257 = arith.addf %255, %256 : vector<8x64xf32>
    %258 = arith.negf %257 : vector<8x64xf32>
    %259 = math.exp %258 : vector<8x64xf32>
    %cst_45 = arith.constant 1.000000e+00 : f32
    %260 = vector.broadcast %cst_45 : f32 to vector<8x64xf32>
    %261 = arith.addf %260, %259 : vector<8x64xf32>
    %262 = arith.divf %260, %261 : vector<8x64xf32>
    %263 = vector.extract_strided_slice %56 {offsets = [0, 64], sizes = [8, 64], strides = [1, 1]} : vector<8x192xf32> to vector<8x64xf32>
    %264 = vector.extract_strided_slice %254 {offsets = [0, 64], sizes = [8, 64], strides = [1, 1]} : vector<8x192xf32> to vector<8x64xf32>
    %265 = arith.addf %263, %264 : vector<8x64xf32>
    %266 = arith.negf %265 : vector<8x64xf32>
    %267 = math.exp %266 : vector<8x64xf32>
    %cst_46 = arith.constant 1.000000e+00 : f32
    %268 = vector.broadcast %cst_46 : f32 to vector<8x64xf32>
    %269 = arith.addf %268, %267 : vector<8x64xf32>
    %270 = arith.divf %268, %269 : vector<8x64xf32>
    %271 = vector.extract_strided_slice %56 {offsets = [0, 128], sizes = [8, 64], strides = [1, 1]} : vector<8x192xf32> to vector<8x64xf32>
    %272 = vector.extract_strided_slice %254 {offsets = [0, 128], sizes = [8, 64], strides = [1, 1]} : vector<8x192xf32> to vector<8x64xf32>
    %273 = arith.addf %272, %32 : vector<8x64xf32>
    %274 = arith.mulf %262, %273 : vector<8x64xf32>
    %275 = arith.addf %271, %274 : vector<8x64xf32>
    %276 = math.tanh %275 : vector<8x64xf32>
    %cst_47 = arith.constant 1.000000e+00 : f32
    %277 = vector.broadcast %cst_47 : f32 to vector<8x64xf32>
    %278 = arith.subf %277, %270 : vector<8x64xf32>
    %279 = arith.mulf %278, %276 : vector<8x64xf32>
    %280 = arith.mulf %270, %253 : vector<8x64xf32>
    %281 = arith.addf %279, %280 : vector<8x64xf32>
    %282 = arith.select %21, %85, %281 : vector<8x64xi1>, vector<8x64xf32>
    %283 = arith.select %21, %113, %253 : vector<8x64xi1>, vector<8x64xf32>
    %284 = arith.select %21, %141, %225 : vector<8x64xi1>, vector<8x64xf32>
    %285 = arith.select %21, %169, %197 : vector<8x64xi1>, vector<8x64xf32>
    %286 = arith.select %21, %197, %169 : vector<8x64xi1>, vector<8x64xf32>
    %287 = arith.select %21, %225, %141 : vector<8x64xi1>, vector<8x64xf32>
    %288 = arith.select %21, %253, %113 : vector<8x64xi1>, vector<8x64xf32>
    %289 = arith.select %21, %281, %85 : vector<8x64xi1>, vector<8x64xf32>
    %290 = tpu.concatenate %282, %283, %284, %285, %286, %287, %288, %289 in 0 : vector<8x64xf32>, vector<8x64xf32>, vector<8x64xf32>, vector<8x64xf32>, vector<8x64xf32>, vector<8x64xf32>, vector<8x64xf32>, vector<8x64xf32> -> vector<64x64xf32>
    %c0_48 = arith.constant 0 : index
    %c0_49 = arith.constant 0 : index
    %291 = vector.load %arg6[%c0_48, %c0_49] : memref<64x192xf32, #tpu.memory_space<vmem>>, vector<64x192xf32>
    %cst_50 = arith.constant dense<0.000000e+00> : vector<64x192xf32>
    %292 = tpu.matmul %290, %291, %cst_50 {dimension_numbers = #tpu.dot_dimension_numbers<[1], [0], [0], [1], [0, 0, 1, 1], [], []>} : vector<64x64xf32>, vector<64x192xf32>, vector<64x192xf32> -> vector<64x192xf32>
    %c0_51 = arith.constant 0 : index
    %c0_52 = arith.constant 0 : index
    %293 = vector.load %arg7[%c0_51, %c0_52] : memref<32x192xf32, #tpu.memory_space<vmem>>, vector<32x192xf32>
    %cst_53 = arith.constant dense<0.000000e+00> : vector<64x192xf32>
    %294 = tpu.matmul %23, %293, %cst_53 {dimension_numbers = #tpu.dot_dimension_numbers<[1], [0], [0], [1], [0, 0, 1, 1], [], []>} : vector<64x32xf32>, vector<32x192xf32>, vector<64x192xf32> -> vector<64x192xf32>
    %295 = arith.addf %292, %294 : vector<64x192xf32>
    %c0_54 = arith.constant 0 : index
    %c0_55 = arith.constant 0 : index
    %296 = vector.load %arg8[%c0_54, %c0_55] : memref<1x192xf32, #tpu.memory_space<vmem>>, vector<1x192xf32>
    %297 = vector.broadcast %296 : vector<1x192xf32> to vector<64x192xf32>
    %298 = arith.addf %295, %297 : vector<64x192xf32>
    %c0_56 = arith.constant 0 : index
    %c0_57 = arith.constant 0 : index
    %299 = vector.load %arg9[%c0_56, %c0_57] : memref<64x192xf32, #tpu.memory_space<vmem>>, vector<64x192xf32>
    %c0_58 = arith.constant 0 : index
    %c0_59 = arith.constant 0 : index
    %300 = vector.load %arg10[%c0_58, %c0_59] : memref<1x64xf32, #tpu.memory_space<vmem>>, vector<1x64xf32>
    %301 = vector.shape_cast %300 : vector<1x64xf32> to vector<1x64xf32>
    %302 = vector.broadcast %301 : vector<1x64xf32> to vector<8x64xf32>
    %303 = vector.extract_strided_slice %298 {offsets = [0, 0], sizes = [8, 192], strides = [1, 1]} : vector<64x192xf32> to vector<8x192xf32>
    %304 = vector.extract_strided_slice %298 {offsets = [56, 0], sizes = [8, 192], strides = [1, 1]} : vector<64x192xf32> to vector<8x192xf32>
    %305 = arith.select %18, %303, %304 : vector<8x192xi1>, vector<8x192xf32>
    %306 = vector.extract_strided_slice %298 {offsets = [8, 0], sizes = [8, 192], strides = [1, 1]} : vector<64x192xf32> to vector<8x192xf32>
    %307 = vector.extract_strided_slice %298 {offsets = [48, 0], sizes = [8, 192], strides = [1, 1]} : vector<64x192xf32> to vector<8x192xf32>
    %308 = arith.select %18, %306, %307 : vector<8x192xi1>, vector<8x192xf32>
    %309 = vector.extract_strided_slice %298 {offsets = [16, 0], sizes = [8, 192], strides = [1, 1]} : vector<64x192xf32> to vector<8x192xf32>
    %310 = vector.extract_strided_slice %298 {offsets = [40, 0], sizes = [8, 192], strides = [1, 1]} : vector<64x192xf32> to vector<8x192xf32>
    %311 = arith.select %18, %309, %310 : vector<8x192xi1>, vector<8x192xf32>
    %312 = vector.extract_strided_slice %298 {offsets = [24, 0], sizes = [8, 192], strides = [1, 1]} : vector<64x192xf32> to vector<8x192xf32>
    %313 = vector.extract_strided_slice %298 {offsets = [32, 0], sizes = [8, 192], strides = [1, 1]} : vector<64x192xf32> to vector<8x192xf32>
    %314 = arith.select %18, %312, %313 : vector<8x192xi1>, vector<8x192xf32>
    %315 = vector.extract_strided_slice %298 {offsets = [32, 0], sizes = [8, 192], strides = [1, 1]} : vector<64x192xf32> to vector<8x192xf32>
    %316 = vector.extract_strided_slice %298 {offsets = [24, 0], sizes = [8, 192], strides = [1, 1]} : vector<64x192xf32> to vector<8x192xf32>
    %317 = arith.select %18, %315, %316 : vector<8x192xi1>, vector<8x192xf32>
    %318 = vector.extract_strided_slice %298 {offsets = [40, 0], sizes = [8, 192], strides = [1, 1]} : vector<64x192xf32> to vector<8x192xf32>
    %319 = vector.extract_strided_slice %298 {offsets = [16, 0], sizes = [8, 192], strides = [1, 1]} : vector<64x192xf32> to vector<8x192xf32>
    %320 = arith.select %18, %318, %319 : vector<8x192xi1>, vector<8x192xf32>
    %321 = vector.extract_strided_slice %298 {offsets = [48, 0], sizes = [8, 192], strides = [1, 1]} : vector<64x192xf32> to vector<8x192xf32>
    %322 = vector.extract_strided_slice %298 {offsets = [8, 0], sizes = [8, 192], strides = [1, 1]} : vector<64x192xf32> to vector<8x192xf32>
    %323 = arith.select %18, %321, %322 : vector<8x192xi1>, vector<8x192xf32>
    %324 = vector.extract_strided_slice %298 {offsets = [56, 0], sizes = [8, 192], strides = [1, 1]} : vector<64x192xf32> to vector<8x192xf32>
    %325 = vector.extract_strided_slice %298 {offsets = [0, 0], sizes = [8, 192], strides = [1, 1]} : vector<64x192xf32> to vector<8x192xf32>
    %326 = arith.select %18, %324, %325 : vector<8x192xi1>, vector<8x192xf32>
    %cst_60 = arith.constant 0.000000e+00 : f32
    %327 = vector.broadcast %cst_60 : f32 to vector<8x64xf32>
    %cst_61 = arith.constant dense<0.000000e+00> : vector<8x192xf32>
    %328 = tpu.matmul %327, %299, %cst_61 {dimension_numbers = #tpu.dot_dimension_numbers<[1], [0], [0], [1], [0, 0, 1, 1], [], []>} : vector<8x64xf32>, vector<64x192xf32>, vector<8x192xf32> -> vector<8x192xf32>
    %329 = vector.extract_strided_slice %305 {offsets = [0, 0], sizes = [8, 64], strides = [1, 1]} : vector<8x192xf32> to vector<8x64xf32>
    %330 = vector.extract_strided_slice %328 {offsets = [0, 0], sizes = [8, 64], strides = [1, 1]} : vector<8x192xf32> to vector<8x64xf32>
    %331 = arith.addf %329, %330 : vector<8x64xf32>
    %332 = arith.negf %331 : vector<8x64xf32>
    %333 = math.exp %332 : vector<8x64xf32>
    %cst_62 = arith.constant 1.000000e+00 : f32
    %334 = vector.broadcast %cst_62 : f32 to vector<8x64xf32>
    %335 = arith.addf %334, %333 : vector<8x64xf32>
    %336 = arith.divf %334, %335 : vector<8x64xf32>
    %337 = vector.extract_strided_slice %305 {offsets = [0, 64], sizes = [8, 64], strides = [1, 1]} : vector<8x192xf32> to vector<8x64xf32>
    %338 = vector.extract_strided_slice %328 {offsets = [0, 64], sizes = [8, 64], strides = [1, 1]} : vector<8x192xf32> to vector<8x64xf32>
    %339 = arith.addf %337, %338 : vector<8x64xf32>
    %340 = arith.negf %339 : vector<8x64xf32>
    %341 = math.exp %340 : vector<8x64xf32>
    %cst_63 = arith.constant 1.000000e+00 : f32
    %342 = vector.broadcast %cst_63 : f32 to vector<8x64xf32>
    %343 = arith.addf %342, %341 : vector<8x64xf32>
    %344 = arith.divf %342, %343 : vector<8x64xf32>
    %345 = vector.extract_strided_slice %305 {offsets = [0, 128], sizes = [8, 64], strides = [1, 1]} : vector<8x192xf32> to vector<8x64xf32>
    %346 = vector.extract_strided_slice %328 {offsets = [0, 128], sizes = [8, 64], strides = [1, 1]} : vector<8x192xf32> to vector<8x64xf32>
    %347 = arith.addf %346, %302 : vector<8x64xf32>
    %348 = arith.mulf %336, %347 : vector<8x64xf32>
    %349 = arith.addf %345, %348 : vector<8x64xf32>
    %350 = math.tanh %349 : vector<8x64xf32>
    %cst_64 = arith.constant 1.000000e+00 : f32
    %351 = vector.broadcast %cst_64 : f32 to vector<8x64xf32>
    %352 = arith.subf %351, %344 : vector<8x64xf32>
    %353 = arith.mulf %352, %350 : vector<8x64xf32>
    %354 = arith.mulf %344, %327 : vector<8x64xf32>
    %355 = arith.addf %353, %354 : vector<8x64xf32>
    %cst_65 = arith.constant dense<0.000000e+00> : vector<8x192xf32>
    %356 = tpu.matmul %355, %299, %cst_65 {dimension_numbers = #tpu.dot_dimension_numbers<[1], [0], [0], [1], [0, 0, 1, 1], [], []>} : vector<8x64xf32>, vector<64x192xf32>, vector<8x192xf32> -> vector<8x192xf32>
    %357 = vector.extract_strided_slice %308 {offsets = [0, 0], sizes = [8, 64], strides = [1, 1]} : vector<8x192xf32> to vector<8x64xf32>
    %358 = vector.extract_strided_slice %356 {offsets = [0, 0], sizes = [8, 64], strides = [1, 1]} : vector<8x192xf32> to vector<8x64xf32>
    %359 = arith.addf %357, %358 : vector<8x64xf32>
    %360 = arith.negf %359 : vector<8x64xf32>
    %361 = math.exp %360 : vector<8x64xf32>
    %cst_66 = arith.constant 1.000000e+00 : f32
    %362 = vector.broadcast %cst_66 : f32 to vector<8x64xf32>
    %363 = arith.addf %362, %361 : vector<8x64xf32>
    %364 = arith.divf %362, %363 : vector<8x64xf32>
    %365 = vector.extract_strided_slice %308 {offsets = [0, 64], sizes = [8, 64], strides = [1, 1]} : vector<8x192xf32> to vector<8x64xf32>
    %366 = vector.extract_strided_slice %356 {offsets = [0, 64], sizes = [8, 64], strides = [1, 1]} : vector<8x192xf32> to vector<8x64xf32>
    %367 = arith.addf %365, %366 : vector<8x64xf32>
    %368 = arith.negf %367 : vector<8x64xf32>
    %369 = math.exp %368 : vector<8x64xf32>
    %cst_67 = arith.constant 1.000000e+00 : f32
    %370 = vector.broadcast %cst_67 : f32 to vector<8x64xf32>
    %371 = arith.addf %370, %369 : vector<8x64xf32>
    %372 = arith.divf %370, %371 : vector<8x64xf32>
    %373 = vector.extract_strided_slice %308 {offsets = [0, 128], sizes = [8, 64], strides = [1, 1]} : vector<8x192xf32> to vector<8x64xf32>
    %374 = vector.extract_strided_slice %356 {offsets = [0, 128], sizes = [8, 64], strides = [1, 1]} : vector<8x192xf32> to vector<8x64xf32>
    %375 = arith.addf %374, %302 : vector<8x64xf32>
    %376 = arith.mulf %364, %375 : vector<8x64xf32>
    %377 = arith.addf %373, %376 : vector<8x64xf32>
    %378 = math.tanh %377 : vector<8x64xf32>
    %cst_68 = arith.constant 1.000000e+00 : f32
    %379 = vector.broadcast %cst_68 : f32 to vector<8x64xf32>
    %380 = arith.subf %379, %372 : vector<8x64xf32>
    %381 = arith.mulf %380, %378 : vector<8x64xf32>
    %382 = arith.mulf %372, %355 : vector<8x64xf32>
    %383 = arith.addf %381, %382 : vector<8x64xf32>
    %cst_69 = arith.constant dense<0.000000e+00> : vector<8x192xf32>
    %384 = tpu.matmul %383, %299, %cst_69 {dimension_numbers = #tpu.dot_dimension_numbers<[1], [0], [0], [1], [0, 0, 1, 1], [], []>} : vector<8x64xf32>, vector<64x192xf32>, vector<8x192xf32> -> vector<8x192xf32>
    %385 = vector.extract_strided_slice %311 {offsets = [0, 0], sizes = [8, 64], strides = [1, 1]} : vector<8x192xf32> to vector<8x64xf32>
    %386 = vector.extract_strided_slice %384 {offsets = [0, 0], sizes = [8, 64], strides = [1, 1]} : vector<8x192xf32> to vector<8x64xf32>
    %387 = arith.addf %385, %386 : vector<8x64xf32>
    %388 = arith.negf %387 : vector<8x64xf32>
    %389 = math.exp %388 : vector<8x64xf32>
    %cst_70 = arith.constant 1.000000e+00 : f32
    %390 = vector.broadcast %cst_70 : f32 to vector<8x64xf32>
    %391 = arith.addf %390, %389 : vector<8x64xf32>
    %392 = arith.divf %390, %391 : vector<8x64xf32>
    %393 = vector.extract_strided_slice %311 {offsets = [0, 64], sizes = [8, 64], strides = [1, 1]} : vector<8x192xf32> to vector<8x64xf32>
    %394 = vector.extract_strided_slice %384 {offsets = [0, 64], sizes = [8, 64], strides = [1, 1]} : vector<8x192xf32> to vector<8x64xf32>
    %395 = arith.addf %393, %394 : vector<8x64xf32>
    %396 = arith.negf %395 : vector<8x64xf32>
    %397 = math.exp %396 : vector<8x64xf32>
    %cst_71 = arith.constant 1.000000e+00 : f32
    %398 = vector.broadcast %cst_71 : f32 to vector<8x64xf32>
    %399 = arith.addf %398, %397 : vector<8x64xf32>
    %400 = arith.divf %398, %399 : vector<8x64xf32>
    %401 = vector.extract_strided_slice %311 {offsets = [0, 128], sizes = [8, 64], strides = [1, 1]} : vector<8x192xf32> to vector<8x64xf32>
    %402 = vector.extract_strided_slice %384 {offsets = [0, 128], sizes = [8, 64], strides = [1, 1]} : vector<8x192xf32> to vector<8x64xf32>
    %403 = arith.addf %402, %302 : vector<8x64xf32>
    %404 = arith.mulf %392, %403 : vector<8x64xf32>
    %405 = arith.addf %401, %404 : vector<8x64xf32>
    %406 = math.tanh %405 : vector<8x64xf32>
    %cst_72 = arith.constant 1.000000e+00 : f32
    %407 = vector.broadcast %cst_72 : f32 to vector<8x64xf32>
    %408 = arith.subf %407, %400 : vector<8x64xf32>
    %409 = arith.mulf %408, %406 : vector<8x64xf32>
    %410 = arith.mulf %400, %383 : vector<8x64xf32>
    %411 = arith.addf %409, %410 : vector<8x64xf32>
    %cst_73 = arith.constant dense<0.000000e+00> : vector<8x192xf32>
    %412 = tpu.matmul %411, %299, %cst_73 {dimension_numbers = #tpu.dot_dimension_numbers<[1], [0], [0], [1], [0, 0, 1, 1], [], []>} : vector<8x64xf32>, vector<64x192xf32>, vector<8x192xf32> -> vector<8x192xf32>
    %413 = vector.extract_strided_slice %314 {offsets = [0, 0], sizes = [8, 64], strides = [1, 1]} : vector<8x192xf32> to vector<8x64xf32>
    %414 = vector.extract_strided_slice %412 {offsets = [0, 0], sizes = [8, 64], strides = [1, 1]} : vector<8x192xf32> to vector<8x64xf32>
    %415 = arith.addf %413, %414 : vector<8x64xf32>
    %416 = arith.negf %415 : vector<8x64xf32>
    %417 = math.exp %416 : vector<8x64xf32>
    %cst_74 = arith.constant 1.000000e+00 : f32
    %418 = vector.broadcast %cst_74 : f32 to vector<8x64xf32>
    %419 = arith.addf %418, %417 : vector<8x64xf32>
    %420 = arith.divf %418, %419 : vector<8x64xf32>
    %421 = vector.extract_strided_slice %314 {offsets = [0, 64], sizes = [8, 64], strides = [1, 1]} : vector<8x192xf32> to vector<8x64xf32>
    %422 = vector.extract_strided_slice %412 {offsets = [0, 64], sizes = [8, 64], strides = [1, 1]} : vector<8x192xf32> to vector<8x64xf32>
    %423 = arith.addf %421, %422 : vector<8x64xf32>
    %424 = arith.negf %423 : vector<8x64xf32>
    %425 = math.exp %424 : vector<8x64xf32>
    %cst_75 = arith.constant 1.000000e+00 : f32
    %426 = vector.broadcast %cst_75 : f32 to vector<8x64xf32>
    %427 = arith.addf %426, %425 : vector<8x64xf32>
    %428 = arith.divf %426, %427 : vector<8x64xf32>
    %429 = vector.extract_strided_slice %314 {offsets = [0, 128], sizes = [8, 64], strides = [1, 1]} : vector<8x192xf32> to vector<8x64xf32>
    %430 = vector.extract_strided_slice %412 {offsets = [0, 128], sizes = [8, 64], strides = [1, 1]} : vector<8x192xf32> to vector<8x64xf32>
    %431 = arith.addf %430, %302 : vector<8x64xf32>
    %432 = arith.mulf %420, %431 : vector<8x64xf32>
    %433 = arith.addf %429, %432 : vector<8x64xf32>
    %434 = math.tanh %433 : vector<8x64xf32>
    %cst_76 = arith.constant 1.000000e+00 : f32
    %435 = vector.broadcast %cst_76 : f32 to vector<8x64xf32>
    %436 = arith.subf %435, %428 : vector<8x64xf32>
    %437 = arith.mulf %436, %434 : vector<8x64xf32>
    %438 = arith.mulf %428, %411 : vector<8x64xf32>
    %439 = arith.addf %437, %438 : vector<8x64xf32>
    %cst_77 = arith.constant dense<0.000000e+00> : vector<8x192xf32>
    %440 = tpu.matmul %439, %299, %cst_77 {dimension_numbers = #tpu.dot_dimension_numbers<[1], [0], [0], [1], [0, 0, 1, 1], [], []>} : vector<8x64xf32>, vector<64x192xf32>, vector<8x192xf32> -> vector<8x192xf32>
    %441 = vector.extract_strided_slice %317 {offsets = [0, 0], sizes = [8, 64], strides = [1, 1]} : vector<8x192xf32> to vector<8x64xf32>
    %442 = vector.extract_strided_slice %440 {offsets = [0, 0], sizes = [8, 64], strides = [1, 1]} : vector<8x192xf32> to vector<8x64xf32>
    %443 = arith.addf %441, %442 : vector<8x64xf32>
    %444 = arith.negf %443 : vector<8x64xf32>
    %445 = math.exp %444 : vector<8x64xf32>
    %cst_78 = arith.constant 1.000000e+00 : f32
    %446 = vector.broadcast %cst_78 : f32 to vector<8x64xf32>
    %447 = arith.addf %446, %445 : vector<8x64xf32>
    %448 = arith.divf %446, %447 : vector<8x64xf32>
    %449 = vector.extract_strided_slice %317 {offsets = [0, 64], sizes = [8, 64], strides = [1, 1]} : vector<8x192xf32> to vector<8x64xf32>
    %450 = vector.extract_strided_slice %440 {offsets = [0, 64], sizes = [8, 64], strides = [1, 1]} : vector<8x192xf32> to vector<8x64xf32>
    %451 = arith.addf %449, %450 : vector<8x64xf32>
    %452 = arith.negf %451 : vector<8x64xf32>
    %453 = math.exp %452 : vector<8x64xf32>
    %cst_79 = arith.constant 1.000000e+00 : f32
    %454 = vector.broadcast %cst_79 : f32 to vector<8x64xf32>
    %455 = arith.addf %454, %453 : vector<8x64xf32>
    %456 = arith.divf %454, %455 : vector<8x64xf32>
    %457 = vector.extract_strided_slice %317 {offsets = [0, 128], sizes = [8, 64], strides = [1, 1]} : vector<8x192xf32> to vector<8x64xf32>
    %458 = vector.extract_strided_slice %440 {offsets = [0, 128], sizes = [8, 64], strides = [1, 1]} : vector<8x192xf32> to vector<8x64xf32>
    %459 = arith.addf %458, %302 : vector<8x64xf32>
    %460 = arith.mulf %448, %459 : vector<8x64xf32>
    %461 = arith.addf %457, %460 : vector<8x64xf32>
    %462 = math.tanh %461 : vector<8x64xf32>
    %cst_80 = arith.constant 1.000000e+00 : f32
    %463 = vector.broadcast %cst_80 : f32 to vector<8x64xf32>
    %464 = arith.subf %463, %456 : vector<8x64xf32>
    %465 = arith.mulf %464, %462 : vector<8x64xf32>
    %466 = arith.mulf %456, %439 : vector<8x64xf32>
    %467 = arith.addf %465, %466 : vector<8x64xf32>
    %cst_81 = arith.constant dense<0.000000e+00> : vector<8x192xf32>
    %468 = tpu.matmul %467, %299, %cst_81 {dimension_numbers = #tpu.dot_dimension_numbers<[1], [0], [0], [1], [0, 0, 1, 1], [], []>} : vector<8x64xf32>, vector<64x192xf32>, vector<8x192xf32> -> vector<8x192xf32>
    %469 = vector.extract_strided_slice %320 {offsets = [0, 0], sizes = [8, 64], strides = [1, 1]} : vector<8x192xf32> to vector<8x64xf32>
    %470 = vector.extract_strided_slice %468 {offsets = [0, 0], sizes = [8, 64], strides = [1, 1]} : vector<8x192xf32> to vector<8x64xf32>
    %471 = arith.addf %469, %470 : vector<8x64xf32>
    %472 = arith.negf %471 : vector<8x64xf32>
    %473 = math.exp %472 : vector<8x64xf32>
    %cst_82 = arith.constant 1.000000e+00 : f32
    %474 = vector.broadcast %cst_82 : f32 to vector<8x64xf32>
    %475 = arith.addf %474, %473 : vector<8x64xf32>
    %476 = arith.divf %474, %475 : vector<8x64xf32>
    %477 = vector.extract_strided_slice %320 {offsets = [0, 64], sizes = [8, 64], strides = [1, 1]} : vector<8x192xf32> to vector<8x64xf32>
    %478 = vector.extract_strided_slice %468 {offsets = [0, 64], sizes = [8, 64], strides = [1, 1]} : vector<8x192xf32> to vector<8x64xf32>
    %479 = arith.addf %477, %478 : vector<8x64xf32>
    %480 = arith.negf %479 : vector<8x64xf32>
    %481 = math.exp %480 : vector<8x64xf32>
    %cst_83 = arith.constant 1.000000e+00 : f32
    %482 = vector.broadcast %cst_83 : f32 to vector<8x64xf32>
    %483 = arith.addf %482, %481 : vector<8x64xf32>
    %484 = arith.divf %482, %483 : vector<8x64xf32>
    %485 = vector.extract_strided_slice %320 {offsets = [0, 128], sizes = [8, 64], strides = [1, 1]} : vector<8x192xf32> to vector<8x64xf32>
    %486 = vector.extract_strided_slice %468 {offsets = [0, 128], sizes = [8, 64], strides = [1, 1]} : vector<8x192xf32> to vector<8x64xf32>
    %487 = arith.addf %486, %302 : vector<8x64xf32>
    %488 = arith.mulf %476, %487 : vector<8x64xf32>
    %489 = arith.addf %485, %488 : vector<8x64xf32>
    %490 = math.tanh %489 : vector<8x64xf32>
    %cst_84 = arith.constant 1.000000e+00 : f32
    %491 = vector.broadcast %cst_84 : f32 to vector<8x64xf32>
    %492 = arith.subf %491, %484 : vector<8x64xf32>
    %493 = arith.mulf %492, %490 : vector<8x64xf32>
    %494 = arith.mulf %484, %467 : vector<8x64xf32>
    %495 = arith.addf %493, %494 : vector<8x64xf32>
    %cst_85 = arith.constant dense<0.000000e+00> : vector<8x192xf32>
    %496 = tpu.matmul %495, %299, %cst_85 {dimension_numbers = #tpu.dot_dimension_numbers<[1], [0], [0], [1], [0, 0, 1, 1], [], []>} : vector<8x64xf32>, vector<64x192xf32>, vector<8x192xf32> -> vector<8x192xf32>
    %497 = vector.extract_strided_slice %323 {offsets = [0, 0], sizes = [8, 64], strides = [1, 1]} : vector<8x192xf32> to vector<8x64xf32>
    %498 = vector.extract_strided_slice %496 {offsets = [0, 0], sizes = [8, 64], strides = [1, 1]} : vector<8x192xf32> to vector<8x64xf32>
    %499 = arith.addf %497, %498 : vector<8x64xf32>
    %500 = arith.negf %499 : vector<8x64xf32>
    %501 = math.exp %500 : vector<8x64xf32>
    %cst_86 = arith.constant 1.000000e+00 : f32
    %502 = vector.broadcast %cst_86 : f32 to vector<8x64xf32>
    %503 = arith.addf %502, %501 : vector<8x64xf32>
    %504 = arith.divf %502, %503 : vector<8x64xf32>
    %505 = vector.extract_strided_slice %323 {offsets = [0, 64], sizes = [8, 64], strides = [1, 1]} : vector<8x192xf32> to vector<8x64xf32>
    %506 = vector.extract_strided_slice %496 {offsets = [0, 64], sizes = [8, 64], strides = [1, 1]} : vector<8x192xf32> to vector<8x64xf32>
    %507 = arith.addf %505, %506 : vector<8x64xf32>
    %508 = arith.negf %507 : vector<8x64xf32>
    %509 = math.exp %508 : vector<8x64xf32>
    %cst_87 = arith.constant 1.000000e+00 : f32
    %510 = vector.broadcast %cst_87 : f32 to vector<8x64xf32>
    %511 = arith.addf %510, %509 : vector<8x64xf32>
    %512 = arith.divf %510, %511 : vector<8x64xf32>
    %513 = vector.extract_strided_slice %323 {offsets = [0, 128], sizes = [8, 64], strides = [1, 1]} : vector<8x192xf32> to vector<8x64xf32>
    %514 = vector.extract_strided_slice %496 {offsets = [0, 128], sizes = [8, 64], strides = [1, 1]} : vector<8x192xf32> to vector<8x64xf32>
    %515 = arith.addf %514, %302 : vector<8x64xf32>
    %516 = arith.mulf %504, %515 : vector<8x64xf32>
    %517 = arith.addf %513, %516 : vector<8x64xf32>
    %518 = math.tanh %517 : vector<8x64xf32>
    %cst_88 = arith.constant 1.000000e+00 : f32
    %519 = vector.broadcast %cst_88 : f32 to vector<8x64xf32>
    %520 = arith.subf %519, %512 : vector<8x64xf32>
    %521 = arith.mulf %520, %518 : vector<8x64xf32>
    %522 = arith.mulf %512, %495 : vector<8x64xf32>
    %523 = arith.addf %521, %522 : vector<8x64xf32>
    %cst_89 = arith.constant dense<0.000000e+00> : vector<8x192xf32>
    %524 = tpu.matmul %523, %299, %cst_89 {dimension_numbers = #tpu.dot_dimension_numbers<[1], [0], [0], [1], [0, 0, 1, 1], [], []>} : vector<8x64xf32>, vector<64x192xf32>, vector<8x192xf32> -> vector<8x192xf32>
    %525 = vector.extract_strided_slice %326 {offsets = [0, 0], sizes = [8, 64], strides = [1, 1]} : vector<8x192xf32> to vector<8x64xf32>
    %526 = vector.extract_strided_slice %524 {offsets = [0, 0], sizes = [8, 64], strides = [1, 1]} : vector<8x192xf32> to vector<8x64xf32>
    %527 = arith.addf %525, %526 : vector<8x64xf32>
    %528 = arith.negf %527 : vector<8x64xf32>
    %529 = math.exp %528 : vector<8x64xf32>
    %cst_90 = arith.constant 1.000000e+00 : f32
    %530 = vector.broadcast %cst_90 : f32 to vector<8x64xf32>
    %531 = arith.addf %530, %529 : vector<8x64xf32>
    %532 = arith.divf %530, %531 : vector<8x64xf32>
    %533 = vector.extract_strided_slice %326 {offsets = [0, 64], sizes = [8, 64], strides = [1, 1]} : vector<8x192xf32> to vector<8x64xf32>
    %534 = vector.extract_strided_slice %524 {offsets = [0, 64], sizes = [8, 64], strides = [1, 1]} : vector<8x192xf32> to vector<8x64xf32>
    %535 = arith.addf %533, %534 : vector<8x64xf32>
    %536 = arith.negf %535 : vector<8x64xf32>
    %537 = math.exp %536 : vector<8x64xf32>
    %cst_91 = arith.constant 1.000000e+00 : f32
    %538 = vector.broadcast %cst_91 : f32 to vector<8x64xf32>
    %539 = arith.addf %538, %537 : vector<8x64xf32>
    %540 = arith.divf %538, %539 : vector<8x64xf32>
    %541 = vector.extract_strided_slice %326 {offsets = [0, 128], sizes = [8, 64], strides = [1, 1]} : vector<8x192xf32> to vector<8x64xf32>
    %542 = vector.extract_strided_slice %524 {offsets = [0, 128], sizes = [8, 64], strides = [1, 1]} : vector<8x192xf32> to vector<8x64xf32>
    %543 = arith.addf %542, %302 : vector<8x64xf32>
    %544 = arith.mulf %532, %543 : vector<8x64xf32>
    %545 = arith.addf %541, %544 : vector<8x64xf32>
    %546 = math.tanh %545 : vector<8x64xf32>
    %cst_92 = arith.constant 1.000000e+00 : f32
    %547 = vector.broadcast %cst_92 : f32 to vector<8x64xf32>
    %548 = arith.subf %547, %540 : vector<8x64xf32>
    %549 = arith.mulf %548, %546 : vector<8x64xf32>
    %550 = arith.mulf %540, %523 : vector<8x64xf32>
    %551 = arith.addf %549, %550 : vector<8x64xf32>
    %552 = arith.maximumf %355, %383 : vector<8x64xf32>
    %553 = arith.maximumf %552, %411 : vector<8x64xf32>
    %554 = arith.maximumf %553, %439 : vector<8x64xf32>
    %555 = arith.maximumf %554, %467 : vector<8x64xf32>
    %556 = arith.maximumf %555, %495 : vector<8x64xf32>
    %557 = arith.maximumf %556, %523 : vector<8x64xf32>
    %558 = arith.maximumf %557, %551 : vector<8x64xf32>
    %c0_93 = arith.constant 0 : index
    %c0_94 = arith.constant 0 : index
    %559 = vector.load %arg11[%c0_93, %c0_94] : memref<64x128xf32, #tpu.memory_space<vmem>>, vector<64x128xf32>
    %cst_95 = arith.constant dense<0.000000e+00> : vector<8x128xf32>
    %560 = tpu.matmul %558, %559, %cst_95 {dimension_numbers = #tpu.dot_dimension_numbers<[1], [0], [0], [1], [0, 0, 1, 1], [], []>} : vector<8x64xf32>, vector<64x128xf32>, vector<8x128xf32> -> vector<8x128xf32>
    %c0_96 = arith.constant 0 : index
    %c0_97 = arith.constant 0 : index
    %561 = vector.load %arg12[%c0_96, %c0_97] : memref<1x128xf32, #tpu.memory_space<vmem>>, vector<1x128xf32>
    %562 = vector.broadcast %561 : vector<1x128xf32> to vector<8x128xf32>
    %563 = arith.addf %560, %562 : vector<8x128xf32>
    %c0_98 = arith.constant 0 : index
    %c0_99 = arith.constant 0 : index
    %564 = vector.load %arg13[%c0_98, %c0_99] : memref<128x128xf32, #tpu.memory_space<vmem>>, vector<128x128xf32>
    %cst_100 = arith.constant dense<0.000000e+00> : vector<8x128xf32>
    %565 = tpu.matmul %563, %564, %cst_100 {dimension_numbers = #tpu.dot_dimension_numbers<[1], [0], [0], [1], [0, 0, 1, 1], [], []>} : vector<8x128xf32>, vector<128x128xf32>, vector<8x128xf32> -> vector<8x128xf32>
    %c0_101 = arith.constant 0 : index
    %c0_102 = arith.constant 0 : index
    %566 = vector.load %arg14[%c0_101, %c0_102] : memref<1x128xf32, #tpu.memory_space<vmem>>, vector<1x128xf32>
    %567 = vector.broadcast %566 : vector<1x128xf32> to vector<8x128xf32>
    %568 = arith.addf %565, %567 : vector<8x128xf32>
    %c0_103 = arith.constant 0 : index
    %c0_104 = arith.constant 0 : index
    %569 = vector.load %arg15[%c0_103, %c0_104] : memref<8x128xf32, #tpu.memory_space<vmem>>, vector<8x128xf32>
    tpu.vector_store %arg15[%c0_103, %c0_104], %568 {strides = array<i32>} : memref<8x128xf32, #tpu.memory_space<vmem>>, vector<8x128xf32>,
    return
  }
}

</mosaic_0001>

<bundles_post_ra>
// kernel: encoder_forward.1
= control target key start
LH: loop header
LB: loop body
LE: loop exit
PB: predicated region body
PF: predicated region fallthrough
CT: control target
= control target key end

     0   :  { %vm118_vm0 = vcmask 523264   ;;  %v3485_v28 = vmov 0.0   ;;  %v50_v54 = vlaneseq  ;;  %s3469_s2 = inlined_call_operand.vmem [shape: f32[64,192], index: 2, kind: input, shape index: {}]   ;;  %s3470_s0 = inlined_call_operand.vmem [shape: f32[64,64], index: 0, kind: input, shape index: {}]   ;;  %s3471_s4 = inlined_call_operand.vmem [shape: f32[64,192], index: 4, kind: input, shape index: {}]   ;;  %s3472_s5 = inlined_call_operand.vmem [shape: f32[1,64], index: 5, kind: input, shape index: {}]   ;;  %s3473_s3 = inlined_call_operand.vmem [shape: f32[1,192], index: 3, kind: input, shape index: {}]   ;;  %s3474_s7 = inlined_call_operand.vmem [shape: f32[32,192], index: 7, kind: input, shape index: {}]   ;;  %s3475_s6 = inlined_call_operand.vmem [shape: f32[64,192], index: 6, kind: input, shape index: {}]   ;;  %s3476_s1 = inlined_call_operand.vmem [shape: f32[64,32], index: 1, kind: input, shape index: {}]   ;;  %s3477_s9 = inlined_call_operand.vmem [shape: f32[64,192], index: 9, kind: input, shape index: {}]   ;;  %s3478_s10 = inlined_call_operand.vmem [shape: f32[1,64], index: 10, kind: input, shape index: {}]   ;;  %s3479_s8 = inlined_call_operand.vmem [shape: f32[1,192], index: 8, kind: input, shape index: {}]   ;;  %s3480_s11 = inlined_call_operand.vmem [shape: f32[64,128], index: 11, kind: input, shape index: {}]   ;;  %s3481_s12 = inlined_call_operand.vmem [shape: f32[1,128], index: 12, kind: input, shape index: {}]   ;;  %s3482_s13 = inlined_call_operand.vmem [shape: f32[128,128], index: 13, kind: input, shape index: {}]   ;;  %s3483_s14 = inlined_call_operand.vmem [shape: f32[1,128], index: 14, kind: input, shape index: {}]   ;;  %s3484_s15 = inlined_call_operand.vmem [shape: f32[8,128], index: 15, kind: output, shape index: {}]  }
   0x1   :  { %v110_v0 = vld [vmem:[%s3469_s2 + $0x70] sm:$0xff]  ;;  %v111_v1 = vld [vmem:[%s3469_s2 + $0x78] sm:$0xff]  ;;  %v108_v2 = vld [vmem:[%s3469_s2 + $0x60] sm:$0xff] }
   0x2   :  { %151 = vmatpush.msra.mxu0 %v110_v0  ;;  %192 = vmatpush.msra.mxu1 %v111_v1  ;;  %v109_v3 = vld [vmem:[%s3469_s2 + $0x68] sm:$0xff]  ;;  %v106_v4 = vld [vmem:[%s3469_s2 + $0x50] sm:$0xff]  ;;  %v107_v5 = vld [vmem:[%s3469_s2 + $0x58] sm:$0xff]  ;;  %v2431_v57 = vand.u32 127, %v50_v54 }
   0x3   :  { %v104_v6 = vld [vmem:[%s3469_s2 + $0x40] sm:$0xff]  ;;  %v105_v7 = vld [vmem:[%s3469_s2 + $0x48] sm:$0xff]  ;;  %v102_v8 = vld [vmem:[%s3469_s2 + $0x30] sm:$0xff] }
   0x4   :  { %152 = vmatpush.msra.mxu0 %v108_v2  ;;  %193 = vmatpush.msra.mxu1 %v109_v3  ;;  %v103_v9 = vld [vmem:[%s3469_s2 + $0x38] sm:$0xff]  ;;  %v100_v10 = vld [vmem:[%s3469_s2 + $0x20] sm:$0xff]  ;;  %v101_v11 = vld [vmem:[%s3469_s2 + $0x28] sm:$0xff]  ;;  %v52_v60 = vadd.s32 128, %v2431_v57  ;;  %v57_v61 = vand.u32 63, %v2431_v57 }
   0x5   :  { %v98_v12 = vld [vmem:[%s3469_s2 + $0x10] sm:$0xff]  ;;  %v99_v13 = vld [vmem:[%s3469_s2 + $0x18] sm:$0xff]  ;;  %v96_v14 = vld [vmem:[%s3469_s2] sm:$0xff] }
   0x6   :  { %153 = vmatpush.msra.mxu0 %v106_v4  ;;  %194 = vmatpush.msra.mxu1 %v107_v5  ;;  %v97_v15 = vld [vmem:[%s3469_s2 + $0x8] sm:$0xff]  ;;  %v80_v16 = vld [vmem:[%s3470_s0] sm:$0xff]  ;;  %v2226_v17 = vld [vmem:[%s3471_s4 + $0x70] sm:$0xff]  ;;  %v64_v62 = vand.u32 63, %v52_v60  ;;  %vm2439_vm1 = vcmp.lt.s32.totalorder %v57_v61, 32 }
   0x7   :  { %272 = vmatpush.msra.mxu2 %v2226_v17  ;;  %v81_v18 = vld [vmem:[%s3470_s0 + $0x8] sm:$0xff]  ;;  %v2236_v19 = vld [vmem:[%s3471_s4 + $0x60] sm:$0xff]  ;;  %v2243_v20 = vld [vmem:[%s3471_s4 + $0x50] sm:$0xff] }
   0x8   :  { %154 = vmatpush.msra.mxu0 %v104_v6  ;;  %195 = vmatpush.msra.mxu1 %v105_v7  ;;  %v2250_v21 = vld [vmem:[%s3471_s4 + $0x40] sm:$0xff]  ;;  %v2257_v22 = vld [vmem:[%s3471_s4 + $0x30] sm:$0xff]  ;;  %v83_v27 = vld [vmem:[%s3470_s0 + $0x18] sm:$0xff]  ;;  %vm2447_vm2 = vcmp.lt.s32.totalorder %v64_v62, 32 }
   0x9   :  { %273 = vmatpush.msra.mxu2 %v2236_v19  ;;  %v82_v23 = vld [vmem:[%s3470_s0 + $0x10] sm:$0xff]  ;;  %v2268_v24 = vld [vmem:[%s3471_s4 + $0x20] sm:$0xff]  ;;  %v2300_v29 = vld [vmem:[%s3471_s4 + $0x78] sm:$0xff] }
   0xa   :  { %155 = vmatpush.msra.mxu0 %v102_v8  ;;  %196 = vmatpush.msra.mxu1 %v103_v9  ;;  %v2276_v25 = vld [vmem:[%s3471_s4 + $0x10] sm:$0xff]  ;;  %v2283_v26 = vld [vmem:[%s3471_s4] sm:$0xff]  ;;  %v2305_v30 = vld [vmem:[%s3471_s4 + $0x68] sm:$0xff] }
   0xb   :  { %274 = vmatpush.msra.mxu2 %v2243_v20  ;;  %292 = vmatpush.msra.mxu3 %v2300_v29  ;;  %v2312_v31 = vld [vmem:[%s3471_s4 + $0x58] sm:$0xff]  ;;  %v2321_v32 = vld [vmem:[%s3471_s4 + $0x48] sm:$0xff]  ;;  %v84_v33 = vld [vmem:[%s3470_s0 + $0x20] sm:$0xff] }
   0xc   :  { %156 = vmatpush.msra.mxu0 %v100_v10  ;;  %197 = vmatpush.msra.mxu1 %v101_v11  ;;  %v2333_v34 = vld [vmem:[%s3471_s4 + $0x38] sm:$0xff]  ;;  %v2344_v35 = vld [vmem:[%s3471_s4 + $0x28] sm:$0xff]  ;;  %v86_v39 = vld [vmem:[%s3470_s0 + $0x30] sm:$0xff] }
   0xd   :  { %275 = vmatpush.msra.mxu2 %v2250_v21  ;;  %293 = vmatpush.msra.mxu3 %v2305_v30  ;;  %v2351_v36 = vld [vmem:[%s3471_s4 + $0x18] sm:$0xff]  ;;  %v2360_v37 = vld [vmem:[%s3471_s4 + $0x8] sm:$0xff]  ;;  %v112_v43 = vld [vmem:[%s3473_s3] sm:$0x3] }
   0xe   :  { %157 = vmatpush.msra.mxu0 %v98_v12  ;;  %198 = vmatpush.msra.mxu1 %v99_v13  ;;  %v85_v38 = vld [vmem:[%s3470_s0 + $0x28] sm:$0xff]  ;;  %v87_v40 = vld [vmem:[%s3470_s0 + $0x38] sm:$0xff]  ;;  %v114_v44 = vperm.slane %v112_v43, 0  ;;  %v115_v45 = vperm.slane %v112_v43, 1 }
   0xf   :  { %276 = vmatpush.msra.mxu2 %v2257_v22  ;;  %294 = vmatpush.msra.mxu3 %v2312_v31  ;;  %v1812_v4 = vld [vmem:[%s3480_s11 + $0x28] sm:$0xff] }
  0x10   :  { %158 = vmatpush.msra.mxu0 %v96_v14  ;;  %199 = vmatpush.msra.mxu1 %v97_v15 }
  0x11   :  { %1889 = vmatmul.msk.f32.vlgmr.msra.gmra.mxu0 %vm118_vm0, %v80_v16  ;;  %1897 = vmatmul.msk.f32.vlgmr.msra.gmra.mxu1 %vm118_vm0, %v80_v16 }
  0x12   :  { %580 = vmatpush.msrb.mxu0 %v2226_v17  ;;  %277 = vmatpush.msra.mxu2 %v2268_v24 }
  0x13   :  { %600 = vmatpush.msrb.mxu1 %v2300_v29  ;;  %295 = vmatpush.msra.mxu3 %v2321_v32 }
  0x14   :  { %581 = vmatpush.msrb.mxu0 %v2236_v19  ;;  %278 = vmatpush.msra.mxu2 %v2276_v25 }
  0x15   :  { %601 = vmatpush.msrb.mxu1 %v2305_v30  ;;  %296 = vmatpush.msra.mxu3 %v2333_v34 }
  0x16   :  { %582 = vmatpush.msrb.mxu0 %v2243_v20  ;;  %279 = vmatpush.msra.mxu2 %v2283_v26 }
  0x17   :  { %280 = vmatmul.f32.vlgmr.msra.gmra.mxu2 %v3485_v28  ;;  %602 = vmatpush.msrb.mxu1 %v2312_v31 }
  0x18   :  { %583 = vmatpush.msrb.mxu0 %v2250_v21  ;;  %349 = vmatpush.msrb.mxu2 %v2226_v17 }
  0x19   :  { %1890 = vmatmul.msk.f32.gmra.mxu0 %vm118_vm0, %v81_v18  ;;  %1898 = vmatmul.msk.f32.gmra.mxu1 %vm118_vm0, %v81_v18 }
  0x1a   :  { %584 = vmatpush.msrb.mxu0 %v2257_v22  ;;  %350 = vmatpush.msrb.mxu2 %v2236_v19 }
  0x1b   :  { %603 = vmatpush.msrb.mxu1 %v2321_v32  ;;  %297 = vmatpush.msra.mxu3 %v2344_v35 }
  0x1c   :  { %585 = vmatpush.msrb.mxu0 %v2268_v24  ;;  %351 = vmatpush.msrb.mxu2 %v2243_v20 }
  0x1d   :  { %604 = vmatpush.msrb.mxu1 %v2333_v34  ;;  %298 = vmatpush.msra.mxu3 %v2351_v36 }
  0x1e   :  { %586 = vmatpush.msrb.mxu0 %v2276_v25  ;;  %352 = vmatpush.msrb.mxu2 %v2250_v21 }
  0x1f   :  { %605 = vmatpush.msrb.mxu1 %v2344_v35  ;;  %299 = vmatpush.msra.mxu3 %v2360_v37 }
  0x20   :  { %587 = vmatpush.msrb.mxu0 %v2283_v26  ;;  %353 = vmatpush.msrb.mxu2 %v2257_v22 }
  0x21   :  { %1891 = vmatmul.msk.f32.gmra.mxu0 %vm118_vm0, %v82_v23  ;;  %1899 = vmatmul.msk.f32.gmra.mxu1 %vm118_vm0, %v82_v23 }
  0x22   :  { %734 = vmatpush.msra.mxu0 %v2226_v17  ;;  %354 = vmatpush.msrb.mxu2 %v2268_v24 }
  0x23   :  { %300 = vmatmul.f32.vlgmr.msra.gmra.mxu3 %v3485_v28  ;;  %606 = vmatpush.msrb.mxu1 %v2351_v36 }
  0x24   :  { %735 = vmatpush.msra.mxu0 %v2236_v19  ;;  %355 = vmatpush.msrb.mxu2 %v2276_v25 }
  0x25   :  { %369 = vmatpush.msrb.mxu3 %v2300_v29  ;;  %607 = vmatpush.msrb.mxu1 %v2360_v37 }
  0x26   :  { %736 = vmatpush.msra.mxu0 %v2243_v20  ;;  %356 = vmatpush.msrb.mxu2 %v2283_v26 }
  0x27   :  { %370 = vmatpush.msrb.mxu3 %v2305_v30  ;;  %754 = vmatpush.msra.mxu1 %v2300_v29 }
  0x28   :  { %737 = vmatpush.msra.mxu0 %v2250_v21  ;;  %426 = vmatpush.msra.mxu2 %v2226_v17 }
  0x29   :  { %1892 = vmatmul.msk.f32.gmra.mxu0 %vm118_vm0, %v83_v27  ;;  %1900 = vmatmul.msk.f32.gmra.mxu1 %vm118_vm0, %v83_v27 }
  0x2a   :  { %738 = vmatpush.msra.mxu0 %v2257_v22  ;;  %427 = vmatpush.msra.mxu2 %v2236_v19 }
  0x2b   :  { %371 = vmatpush.msrb.mxu3 %v2312_v31  ;;  %755 = vmatpush.msra.mxu1 %v2305_v30 }
  0x2c   :  { %739 = vmatpush.msra.mxu0 %v2268_v24  ;;  %428 = vmatpush.msra.mxu2 %v2243_v20 }
  0x2d   :  { %372 = vmatpush.msrb.mxu3 %v2321_v32  ;;  %756 = vmatpush.msra.mxu1 %v2312_v31 }
  0x2e   :  { %740 = vmatpush.msra.mxu0 %v2276_v25  ;;  %429 = vmatpush.msra.mxu2 %v2250_v21 }
  0x2f   :  { %373 = vmatpush.msrb.mxu3 %v2333_v34  ;;  %757 = vmatpush.msra.mxu1 %v2321_v32 }
  0x30   :  { %741 = vmatpush.msra.mxu0 %v2283_v26  ;;  %430 = vmatpush.msra.mxu2 %v2257_v22 }
  0x31   :  { %1893 = vmatmul.msk.f32.gmra.mxu0 %vm118_vm0, %v84_v33  ;;  %1901 = vmatmul.msk.f32.gmra.mxu1 %vm118_vm0, %v84_v33 }
  0x32   :  { %431 = vmatpush.msra.mxu2 %v2268_v24  ;;  %374 = vmatpush.msrb.mxu3 %v2344_v35 }
  0x33   :  { %758 = vmatpush.msra.mxu1 %v2333_v34 }
  0x34   :  { %432 = vmatpush.msra.mxu2 %v2276_v25  ;;  %375 = vmatpush.msrb.mxu3 %v2351_v36 }
  0x35   :  { %759 = vmatpush.msra.mxu1 %v2344_v35 }
  0x36   :  { %433 = vmatpush.msra.mxu2 %v2283_v26  ;;  %376 = vmatpush.msrb.mxu3 %v2360_v37 }
  0x37   :  { %760 = vmatpush.msra.mxu1 %v2351_v36 }
  0x38   :  { %446 = vmatpush.msra.mxu3 %v2300_v29 }
  0x39   :  { %1894 = vmatmul.msk.f32.gmra.mxu0 %vm118_vm0, %v85_v38  ;;  %1902 = vmatmul.msk.f32.gmra.mxu1 %vm118_vm0, %v85_v38 }
  0x3a   :  { %447 = vmatpush.msra.mxu3 %v2305_v30  ;;  %761 = vmatpush.msra.mxu1 %v2360_v37 }
  0x3c   :  { %448 = vmatpush.msra.mxu3 %v2312_v31 }
  0x3e   :  { %449 = vmatpush.msra.mxu3 %v2321_v32 }
  0x40   :  { %450 = vmatpush.msra.mxu3 %v2333_v34 }
  0x41   :  { %1895 = vmatmul.msk.f32.gmra.mxu0 %vm118_vm0, %v86_v39  ;;  %1903 = vmatmul.msk.f32.gmra.mxu1 %vm118_vm0, %v86_v39 }
  0x42   :  { %451 = vmatpush.msra.mxu3 %v2344_v35 }
  0x44   :  { %452 = vmatpush.msra.mxu3 %v2351_v36 }
  0x46   :  { %453 = vmatpush.msra.mxu3 %v2360_v37 }
  0x49   :  { %1896 = vmatmul.msk.f32.gmra.mxu0 %vm118_vm0, %v87_v40  ;;  %1904 = vmatmul.msk.f32.gmra.mxu1 %vm118_vm0, %v87_v40 }
  0x8e   :  { %v160_v41 = vpop.f32.mrf.mxu0  ;;  %v201_v42 = vpop.f32.mrf.mxu1 }
  0x96   :  { %v163_v46 = vpop.f32.mrf.mxu0  ;;  %v204_v47 = vpop.f32.mrf.mxu1 }
  0x97   :  { %v2423_v48 = vadd.f32 %v163_v46, %v114_v44  ;;  %v2425_v49 = vadd.f32 %v204_v47, %v115_v45 }
  0x9e   :  { %v166_v50 = vpop.f32.mrf.mxu0  ;;  %v207_v51 = vpop.f32.mrf.mxu1 }
  0x9f   :  { %v2427_v52 = vadd.f32 %v166_v50, %v114_v44  ;;  %v2429_v53 = vadd.f32 %v207_v51, %v115_v45  ;;  %v2507_v50 = vadd.f32 %v160_v41, %v114_v44  ;;  %v2509_v51 = vadd.f32 %v201_v42, %v115_v45 }
  0xa6   :  { %v169_v55 = vpop.f32.mrf.mxu0  ;;  %v210_v56 = vpop.f32.mrf.mxu1 }
  0xa7   :  { %v2433_v58 = vadd.f32 %v169_v55, %v114_v44  ;;  %v2435_v59 = vadd.f32 %v210_v56, %v115_v45  ;;  %v281_v56 = vpop.f32.mrf.mxu2 }
  0xae   :  { %v172_v63 = vpop.f32.mrf.mxu0  ;;  %v213_v0 = vpop.f32.mrf.mxu1 }
  0xaf   :  { %v2443_v2 = vadd.f32 %v172_v63, %v114_v44  ;;  %v2445_v3 = vadd.f32 %v213_v0, %v115_v45 }
  0xb1   :  { %v252_v5 = vsel %vm2447_vm2, %v2435_v59, %v2445_v3  ;;  %v254_v6 = vsel %vm2447_vm2, %v2445_v3, %v2435_v59  ;;  %v251_v7 = vsel %vm2439_vm1, %v2433_v58, %v2443_v2  ;;  %v253_v8 = vsel %vm2439_vm1, %v2443_v2, %v2433_v58 }
  0xb6   :  { %v175_v9 = vpop.f32.mrf.mxu0  ;;  %v216_v10 = vpop.f32.mrf.mxu1 }
  0xb7   :  { %v2467_v11 = vadd.f32 %v175_v9, %v114_v44  ;;  %v2469_v12 = vadd.f32 %v216_v10, %v115_v45  ;;  %v2530_v9 = vld [vmem:[%s3472_s5] ss:$0 sm:$0xff]  ;;  %s2089_s5 = smov 64  }
  0xb9   :  { %v250_v13 = vsel %vm2447_vm2, %v2429_v53, %v2469_v12  ;;  %v256_v14 = vsel %vm2447_vm2, %v2469_v12, %v2429_v53  ;;  %v249_v15 = vsel %vm2439_vm1, %v2427_v52, %v2467_v11  ;;  %v255_v16 = vsel %vm2439_vm1, %v2467_v11, %v2427_v52 }
  0xbe   :  { %v178_v18 = vpop.f32.mrf.mxu0  ;;  %v219_v23 = vpop.f32.mrf.mxu1 }
  0xbf   :  { %v2487_v27 = vadd.f32 %v178_v18, %v114_v44  ;;  %v2489_v33 = vadd.f32 %v219_v23, %v115_v45  ;;  %v301_v18 = vpop.f32.mrf.mxu3 }
  0xc1   :  { %v248_v38 = vsel %vm2447_vm2, %v2425_v49, %v2489_v33  ;;  %v247_v40 = vsel %vm2439_vm1, %v2423_v48, %v2487_v27  ;;  %v257_v43 = vsel %vm2439_vm1, %v2487_v27, %v2423_v48 }
  0xc6   :  { %v181_v46 = vpop.f32.mrf.mxu0  ;;  %v222_v47 = vpop.f32.mrf.mxu1 }
  0xc7   :  { %v2511_v54 = vadd.f32 %v181_v46, %v114_v44  ;;  %v2513_v55 = vadd.f32 %v222_v47, %v115_v45 }
  0xc9   :  { %v245_v61 = vsel %vm2439_vm1, %v2507_v50, %v2511_v54 }
  0xca   :  { %v304_v42 = vadd.f32 %v281_v56, %v245_v61  ;;  %v324_v56 = vadd.f32 %v2530_v9, %v301_v18 }
  0xcc   :  { %v1905_v44 = vmul.f32 -1.442695, %v304_v42 }
  0xce   :  { %1992 = vpow2.f32 %v1905_v44 }
  0xd4   :  { %v1993_v45 = vpop.eup %1992 }
  0xd5   :  { %v308_v62 = vadd.f32 1.0, %v1993_v45 }
  0xd7   :  { %1994 = vrcp.f32 %v308_v62  ;;  %v320_v23 = vand.u32 2147483648, %v308_v62  ;;  %v318_v47 = vand.u32 2147483647, %v308_v62  ;;  %vm314_vm4 = vweird.f32 %v308_v62 }
  0xd9   :  { %v321_v61 = vor.u32 1.1754944e-38, %v320_v23  ;;  %vm319_vm6 = vcmp.eq.f32.partialorder %v318_v47, 8.507059e+37 }
  0xdd   :  { %v1995_v63 = vpop.eup %1994 }
  0xde   :  { %v310_v0 = vmul.f32 %v1995_v63, %v308_v62  ;;  %vm315_vm3 = vweird.f32 %v1995_v63 }
  0xdf   :  { %vm316_vm5 = vmor %vm314_vm4, %vm315_vm3 }
  0xe0   :  { %v311_v10 = vsub.f32 1.0, %v310_v0  ;;  %v246_v0 = vsel %vm2447_vm2, %v2509_v51, %v2513_v55 }
  0xe2   :  { %v312_v46 = vmul.f32 %v1995_v63, %v311_v10 }
  0xe4   :  { %v313_v28 = vadd.f32 %v1995_v63, %v312_v46 }
  0xe6   :  { %v317_v42 = vsel %vm316_vm5, %v1995_v63, %v313_v28 }
  0xe7   :  { %v322_v44 = vsel %vm319_vm6, %v321_v61, %v317_v42 }
  0xe8   :  { %v325_v45 = vmul.f32 %v324_v56, %v322_v44  ;;  %v328_v62 = vsub.f32 1.0, %v322_v44  ;;  %v334_v18 = vmul.f32 0.0, %v322_v44 }
  0xea   :  { %v326_v60 = vadd.f32 %v325_v45, %v246_v0 }
  0xec   :  { %1996 = vtanh.f32 %v326_v60 }
  0xf2   :  { %v1997_v10 = vpop.eup %1996 }
  0xf3   :  { %330 = vrot.lane.b32.xlu0 %v1997_v10, %s2089_s5 }
 0x165   :  { %v331_v46 = vpop.permute.xlu0 %330 }
 0x166   :  { %v333_v41 = vmul.f32 %v331_v46, %v328_v62 }
 0x168   :  { %v335_v23 = vadd.f32 %v334_v18, %v333_v41 }
 0x16a   :  { %337 = vrot.lane.b32.xlu0 %v335_v23, %s2089_s5 }
 0x1dc   :  { %v2539_v28 = vpop.permute.xlu0 %337 }
 0x1dd   :  { %1906 = vmatmul.msk.f32.vlgmr.msrb.gmra.mxu2 %vm118_vm0, %v2539_v28  ;;  %1907 = vmatmul.msk.f32.vlgmr.msrb.gmra.mxu3 %vm118_vm0, %v2539_v28 }
 0x1de   :  { %503 = vmatpush.msrb.mxu2 %v2226_v17  ;;  %523 = vmatpush.msrb.mxu3 %v2300_v29 }
 0x1e0   :  { %504 = vmatpush.msrb.mxu2 %v2236_v19  ;;  %524 = vmatpush.msrb.mxu3 %v2305_v30 }
 0x1e2   :  { %505 = vmatpush.msrb.mxu2 %v2243_v20  ;;  %525 = vmatpush.msrb.mxu3 %v2312_v31 }
 0x1e4   :  { %506 = vmatpush.msrb.mxu2 %v2250_v21  ;;  %526 = vmatpush.msrb.mxu3 %v2321_v32 }
 0x1e6   :  { %507 = vmatpush.msrb.mxu2 %v2257_v22  ;;  %527 = vmatpush.msrb.mxu3 %v2333_v34 }
 0x1e8   :  { %508 = vmatpush.msrb.mxu2 %v2268_v24  ;;  %528 = vmatpush.msrb.mxu3 %v2344_v35 }
 0x1ea   :  { %509 = vmatpush.msrb.mxu2 %v2276_v25  ;;  %529 = vmatpush.msrb.mxu3 %v2351_v36 }
 0x1ec   :  { %510 = vmatpush.msrb.mxu2 %v2283_v26  ;;  %530 = vmatpush.msrb.mxu3 %v2360_v37 }
 0x260   :  { %v358_v60 = vpop.f32.mrf.mxu2  ;;  %v378_v62 = vpop.f32.mrf.mxu3 }
 0x261   :  { %v381_v41 = vadd.f32 %v358_v60, %v247_v40  ;;  %v401_v40 = vadd.f32 %v2530_v9, %v378_v62 }
 0x263   :  { %v1908_v63 = vmul.f32 -1.442695, %v381_v41 }
 0x265   :  { %1998 = vpow2.f32 %v1908_v63 }
 0x26b   :  { %v1999_v47 = vpop.eup %1998 }
 0x26c   :  { %v385_v56 = vadd.f32 1.0, %v1999_v47 }
 0x26e   :  { %2000 = vrcp.f32 %v385_v56  ;;  %v397_v45 = vand.u32 2147483648, %v385_v56  ;;  %v395_v10 = vand.u32 2147483647, %v385_v56  ;;  %vm391_vm8 = vweird.f32 %v385_v56 }
 0x270   :  { %v398_v18 = vor.u32 1.1754944e-38, %v397_v45  ;;  %vm396_vm10 = vcmp.eq.f32.partialorder %v395_v10, 8.507059e+37 }
 0x274   :  { %v2001_v61 = vpop.eup %2000 }
 0x275   :  { %v387_v42 = vmul.f32 %v2001_v61, %v385_v56  ;;  %vm392_vm7 = vweird.f32 %v2001_v61 }
 0x276   :  { %vm393_vm9 = vmor %vm391_vm8, %vm392_vm7 }
 0x277   :  { %v388_v44 = vsub.f32 1.0, %v387_v42 }
 0x279   :  { %v389_v0 = vmul.f32 %v2001_v61, %v388_v44 }
 0x27b   :  { %v390_v46 = vadd.f32 %v2001_v61, %v389_v0 }
 0x27d   :  { %v394_v39 = vsel %vm393_vm9, %v2001_v61, %v390_v46 }
 0x27e   :  { %v399_v60 = vsel %vm396_vm10, %v398_v18, %v394_v39 }
 0x27f   :  { %v402_v41 = vmul.f32 %v401_v40, %v399_v60  ;;  %v405_v42 = vsub.f32 1.0, %v399_v60  ;;  %v411_v44 = vmul.f32 %v399_v60, %v335_v23 }
 0x281   :  { %v403_v63 = vadd.f32 %v402_v41, %v248_v38 }
 0x283   :  { %2002 = vtanh.f32 %v403_v63 }
 0x289   :  { %v2003_v47 = vpop.eup %2002 }
 0x28a   :  { %407 = vrot.lane.b32.xlu1 %v2003_v47, %s2089_s5 }
 0x2fc   :  { %v408_v56 = vpop.permute.xlu1 %407 }
 0x2fd   :  { %v410_v45 = vmul.f32 %v408_v56, %v405_v42 }
 0x2ff   :  { %v412_v61 = vadd.f32 %v411_v44, %v410_v45 }
 0x301   :  { %414 = vrot.lane.b32.xlu1 %v412_v61, %s2089_s5 }
 0x373   :  { %v2574_v0 = vpop.permute.xlu1 %414 }
 0x374   :  { %1909 = vmatmul.msk.f32.vlgmr.msra.gmra.mxu2 %vm118_vm0, %v2574_v0  ;;  %1910 = vmatmul.msk.f32.vlgmr.msra.gmra.mxu3 %vm118_vm0, %v2574_v0 }
 0x375   :  { %657 = vmatpush.msra.mxu2 %v2226_v17  ;;  %677 = vmatpush.msra.mxu3 %v2300_v29 }
 0x377   :  { %658 = vmatpush.msra.mxu2 %v2236_v19  ;;  %678 = vmatpush.msra.mxu3 %v2305_v30 }
 0x379   :  { %659 = vmatpush.msra.mxu2 %v2243_v20  ;;  %679 = vmatpush.msra.mxu3 %v2312_v31 }
 0x37b   :  { %660 = vmatpush.msra.mxu2 %v2250_v21  ;;  %680 = vmatpush.msra.mxu3 %v2321_v32 }
 0x37d   :  { %661 = vmatpush.msra.mxu2 %v2257_v22  ;;  %681 = vmatpush.msra.mxu3 %v2333_v34 }
 0x37f   :  { %662 = vmatpush.msra.mxu2 %v2268_v24  ;;  %682 = vmatpush.msra.mxu3 %v2344_v35 }
 0x381   :  { %663 = vmatpush.msra.mxu2 %v2276_v25  ;;  %683 = vmatpush.msra.mxu3 %v2351_v36 }
 0x383   :  { %664 = vmatpush.msra.mxu2 %v2283_v26  ;;  %684 = vmatpush.msra.mxu3 %v2360_v37 }
 0x3f7   :  { %v435_v38 = vpop.f32.mrf.mxu2  ;;  %v455_v47 = vpop.f32.mrf.mxu3 }
 0x3f8   :  { %v458_v39 = vadd.f32 %v435_v38, %v249_v15  ;;  %v478_v15 = vadd.f32 %v2530_v9, %v455_v47 }
 0x3fa   :  { %v1911_v23 = vmul.f32 -1.442695, %v458_v39 }
 0x3fc   :  { %2004 = vpow2.f32 %v1911_v23 }
 0x402   :  { %v2005_v10 = vpop.eup %2004 }
 0x403   :  { %v462_v62 = vadd.f32 1.0, %v2005_v10 }
 0x405   :  { %2006 = vrcp.f32 %v462_v62  ;;  %v474_v60 = vand.u32 2147483648, %v462_v62  ;;  %v472_v63 = vand.u32 2147483647, %v462_v62  ;;  %vm468_vm12 = vweird.f32 %v462_v62 }
 0x407   :  { %v475_v56 = vor.u32 1.1754944e-38, %v474_v60  ;;  %vm473_vm14 = vcmp.eq.f32.partialorder %v472_v63, 8.507059e+37 }
 0x40b   :  { %v2007_v46 = vpop.eup %2006 }
 0x40c   :  { %v464_v18 = vmul.f32 %v2007_v46, %v462_v62  ;;  %vm469_vm11 = vweird.f32 %v2007_v46 }
 0x40d   :  { %vm470_vm13 = vmor %vm468_vm12, %vm469_vm11 }
 0x40e   :  { %v465_v40 = vsub.f32 1.0, %v464_v18 }
 0x410   :  { %v466_v41 = vmul.f32 %v2007_v46, %v465_v40 }
 0x412   :  { %v467_v42 = vadd.f32 %v2007_v46, %v466_v41 }
 0x414   :  { %v471_v44 = vsel %vm470_vm13, %v2007_v46, %v467_v42 }
 0x415   :  { %v476_v45 = vsel %vm473_vm14, %v475_v56, %v471_v44 }
 0x416   :  { %v479_v38 = vmul.f32 %v478_v15, %v476_v45  ;;  %v482_v10 = vsub.f32 1.0, %v476_v45  ;;  %v488_v18 = vmul.f32 %v476_v45, %v412_v61 }
 0x418   :  { %v480_v39 = vadd.f32 %v479_v38, %v250_v13 }
 0x41a   :  { %2008 = vtanh.f32 %v480_v39 }
 0x420   :  { %v2009_v23 = vpop.eup %2008 }
 0x421   :  { %484 = vrot.lane.b32.xlu2 %v2009_v23, %s2089_s5 }
 0x47b   :  { %v485_v62 = vpop.permute.xlu2 %484 }
 0x47c   :  { %v487_v40 = vmul.f32 %v485_v62, %v482_v10 }
 0x47e   :  { %v489_v46 = vadd.f32 %v488_v18, %v487_v40 }
 0x480   :  { %491 = vrot.lane.b32.xlu2 %v489_v46, %s2089_s5 }
 0x4da   :  { %v2609_v60 = vpop.permute.xlu2 %491 }
 0x4db   :  { %1912 = vmatmul.msk.f32.vlgmr.msrb.gmra.mxu2 %vm118_vm0, %v2609_v60  ;;  %1913 = vmatmul.msk.f32.vlgmr.msrb.gmra.mxu3 %vm118_vm0, %v2609_v60 }
 0x4dc   :  { %811 = vmatpush.msrb.mxu2 %v2226_v17  ;;  %831 = vmatpush.msrb.mxu3 %v2300_v29 }
 0x4de   :  { %812 = vmatpush.msrb.mxu2 %v2236_v19  ;;  %832 = vmatpush.msrb.mxu3 %v2305_v30 }
 0x4e0   :  { %813 = vmatpush.msrb.mxu2 %v2243_v20  ;;  %833 = vmatpush.msrb.mxu3 %v2312_v31 }
 0x4e2   :  { %814 = vmatpush.msrb.mxu2 %v2250_v21  ;;  %834 = vmatpush.msrb.mxu3 %v2321_v32 }
 0x4e4   :  { %815 = vmatpush.msrb.mxu2 %v2257_v22  ;;  %835 = vmatpush.msrb.mxu3 %v2333_v34 }
 0x4e6   :  { %816 = vmatpush.msrb.mxu2 %v2268_v24  ;;  %836 = vmatpush.msrb.mxu3 %v2344_v35 }
 0x4e8   :  { %817 = vmatpush.msrb.mxu2 %v2276_v25  ;;  %837 = vmatpush.msrb.mxu3 %v2351_v36 }
 0x4ea   :  { %818 = vmatpush.msrb.mxu2 %v2283_v26  ;;  %838 = vmatpush.msrb.mxu3 %v2360_v37 }
 0x55e   :  { %v512_v17 = vpop.f32.mrf.mxu2  ;;  %v532_v32 = vpop.f32.mrf.mxu3 }
 0x55f   :  { %v535_v19 = vadd.f32 %v512_v17, %v251_v7  ;;  %v555_v37 = vadd.f32 %v2530_v9, %v532_v32 }
 0x561   :  { %v1914_v20 = vmul.f32 -1.442695, %v535_v19 }
 0x563   :  { %2010 = vpow2.f32 %v1914_v20 }
 0x569   :  { %v2011_v21 = vpop.eup %2010 }
 0x56a   :  { %v539_v22 = vadd.f32 1.0, %v2011_v21 }
 0x56c   :  { %2012 = vrcp.f32 %v539_v22  ;;  %v551_v30 = vand.u32 2147483648, %v539_v22  ;;  %v549_v26 = vand.u32 2147483647, %v539_v22  ;;  %vm545_vm3 = vweird.f32 %v539_v22 }
 0x56e   :  { %v552_v35 = vor.u32 1.1754944e-38, %v551_v30  ;;  %vm550_vm5 = vcmp.eq.f32.partialorder %v549_v26, 8.507059e+37 }
 0x572   :  { %v2013_v24 = vpop.eup %2012 }
 0x573   :  { %v541_v25 = vmul.f32 %v2013_v24, %v539_v22  ;;  %vm546_vm15 = vweird.f32 %v2013_v24 }
 0x574   :  { %vm547_vm4 = vmor %vm545_vm3, %vm546_vm15 }
 0x575   :  { %v542_v29 = vsub.f32 1.0, %v541_v25 }
 0x577   :  { %v543_v31 = vmul.f32 %v2013_v24, %v542_v29 }
 0x579   :  { %v544_v34 = vadd.f32 %v2013_v24, %v543_v31 }
 0x57b   :  { %v548_v36 = vsel %vm547_vm4, %v2013_v24, %v544_v34 }
 0x57c   :  { %v553_v7 = vsel %vm550_vm5, %v552_v35, %v548_v36 }
 0x57d   :  { %v556_v13 = vmul.f32 %v555_v37, %v553_v7  ;;  %v559_v63 = vsub.f32 1.0, %v553_v7  ;;  %v565_v42 = vmul.f32 %v553_v7, %v489_v46 }
 0x57f   :  { %v557_v61 = vadd.f32 %v556_v13, %v252_v5 }
 0x581   :  { %2014 = vtanh.f32 %v557_v61 }
 0x587   :  { %v2015_v41 = vpop.eup %2014 }
 0x588   :  { %561 = vrot.lane.b32.xlu0 %v2015_v41, %s2089_s5 }
 0x5fa   :  { %v562_v47 = vpop.permute.xlu0 %561 }
 0x5fb   :  { %v564_v56 = vmul.f32 %v562_v47, %v559_v63 }
 0x5fd   :  { %v566_v44 = vadd.f32 %v565_v42, %v564_v56 }
 0x5ff   :  { %568 = vrot.lane.b32.xlu1 %v566_v44, %s2089_s5 }
 0x671   :  { %v2644_v15 = vpop.permute.xlu1 %568 }
 0x672   :  { %1915 = vmatmul.msk.f32.vlgmr.msrb.gmra.mxu0 %vm118_vm0, %v2644_v15  ;;  %1916 = vmatmul.msk.f32.vlgmr.msrb.gmra.mxu1 %vm118_vm0, %v2644_v15 }
 0x6ef   :  { %v589_v5 = vpop.f32.mrf.mxu0  ;;  %v609_v19 = vpop.f32.mrf.mxu1 }
 0x6f0   :  { %v612_v45 = vadd.f32 %v589_v5, %v253_v8  ;;  %v632_v58 = vadd.f32 %v2530_v9, %v609_v19 }
 0x6f2   :  { %v1917_v38 = vmul.f32 -1.442695, %v612_v45 }
 0x6f4   :  { %2016 = vpow2.f32 %v1917_v38 }
 0x6fa   :  { %v2017_v39 = vpop.eup %2016 }
 0x6fb   :  { %v616_v23 = vadd.f32 1.0, %v2017_v39 }
 0x6fd   :  { %2018 = vrcp.f32 %v616_v23  ;;  %v628_v40 = vand.u32 2147483648, %v616_v23  ;;  %v626_v17 = vand.u32 2147483647, %v616_v23  ;;  %vm622_vm7 = vweird.f32 %v616_v23 }
 0x6ff   :  { %v629_v21 = vor.u32 1.1754944e-38, %v628_v40  ;;  %vm627_vm9 = vcmp.eq.f32.partialorder %v626_v17, 8.507059e+37 }
 0x703   :  { %v2019_v10 = vpop.eup %2018 }
 0x704   :  { %v618_v62 = vmul.f32 %v2019_v10, %v616_v23  ;;  %vm623_vm6 = vweird.f32 %v2019_v10 }
 0x705   :  { %vm624_vm8 = vmor %vm622_vm7, %vm623_vm6 }
 0x706   :  { %v619_v18 = vsub.f32 1.0, %v618_v62 }
 0x708   :  { %v620_v46 = vmul.f32 %v2019_v10, %v619_v18 }
 0x70a   :  { %v621_v20 = vadd.f32 %v2019_v10, %v620_v46 }
 0x70c   :  { %v625_v22 = vsel %vm624_vm8, %v2019_v10, %v621_v20 }
 0x70d   :  { %v630_v2 = vsel %vm627_vm9, %v629_v21, %v625_v22  ;;  %vm918_vm9 = vcmask 261120  }
 0x70e   :  { %v633_v8 = vmul.f32 %v632_v58, %v630_v2  ;;  %v636_v29 = vsub.f32 1.0, %v630_v2  ;;  %v642_v31 = vmul.f32 %v630_v2, %v566_v44 }
 0x710   :  { %v634_v24 = vadd.f32 %v633_v8, %v254_v6 }
 0x712   :  { %2020 = vtanh.f32 %v634_v24 }
 0x718   :  { %v2021_v25 = vpop.eup %2020 }
 0x719   :  { %638 = vrot.lane.b32.xlu2 %v2021_v25, %s2089_s5 }
 0x773   :  { %v639_v30 = vpop.permute.xlu2 %638 }
 0x774   :  { %v641_v26 = vmul.f32 %v639_v30, %v636_v29  ;;  %v3491_v29 = vsel %vm2447_vm2, %v2489_v33, %v2425_v49  ;;  %v3492_v33 = vsel %vm2439_vm1, %v2511_v54, %v2507_v50 }
 0x776   :  { %v643_v32 = vadd.f32 %v642_v31, %v641_v26 }
 0x778   :  { %645 = vrot.lane.b32.xlu0 %v643_v32, %s2089_s5 }
 0x7ea   :  { %v2663_v34 = vpop.permute.xlu0 %645 }
 0x7eb   :  { %1918 = vmatmul.msk.f32.vlgmr.msra.gmra.mxu2 %vm118_vm0, %v2663_v34  ;;  %1919 = vmatmul.msk.f32.vlgmr.msra.gmra.mxu3 %vm118_vm0, %v2663_v34 }
 0x86e   :  { %v666_v59 = vpop.f32.mrf.mxu2  ;;  %v686_v47 = vpop.f32.mrf.mxu3 }
 0x86f   :  { %v689_v3 = vadd.f32 %v666_v59, %v255_v16  ;;  %v709_v52 = vadd.f32 %v2530_v9, %v686_v47 }
 0x871   :  { %v1920_v6 = vmul.f32 -1.442695, %v689_v3 }
 0x873   :  { %2022 = vpow2.f32 %v1920_v6 }
 0x879   :  { %v2023_v35 = vpop.eup %2022 }
 0x87a   :  { %v693_v36 = vadd.f32 1.0, %v2023_v35 }
 0x87c   :  { %2024 = vrcp.f32 %v693_v36  ;;  %v705_v61 = vand.u32 2147483648, %v693_v36  ;;  %v703_v63 = vand.u32 2147483647, %v693_v36  ;;  %vm699_vm11 = vweird.f32 %v693_v36 }
 0x87e   :  { %v706_v56 = vor.u32 1.1754944e-38, %v705_v61  ;;  %vm704_vm13 = vcmp.eq.f32.partialorder %v703_v63, 8.507059e+37 }
 0x882   :  { %v2025_v37 = vpop.eup %2024 }
 0x883   :  { %v695_v7 = vmul.f32 %v2025_v37, %v693_v36  ;;  %vm700_vm10 = vweird.f32 %v2025_v37 }
 0x884   :  { %vm701_vm12 = vmor %vm699_vm11, %vm700_vm10  ;;  %vm79_vm10 = vcmp.lt.s32.totalorder %v2431_v57, 32 }
 0x885   :  { %v696_v13 = vsub.f32 1.0, %v695_v7 }
 0x887   :  { %v697_v41 = vmul.f32 %v2025_v37, %v696_v13 }
 0x889   :  { %v698_v42 = vadd.f32 %v2025_v37, %v697_v41 }
 0x88b   :  { %v702_v44 = vsel %vm701_vm12, %v2025_v37, %v698_v42 }
 0x88c   :  { %v707_v11 = vsel %vm704_vm13, %v706_v56, %v702_v44 }
 0x88d   :  { %v710_v16 = vmul.f32 %v709_v52, %v707_v11  ;;  %v713_v38 = vsub.f32 1.0, %v707_v11  ;;  %v719_v23 = vmul.f32 %v707_v11, %v643_v32 }
 0x88f   :  { %v711_v5 = vadd.f32 %v710_v16, %v256_v14 }
 0x891   :  { %2026 = vtanh.f32 %v711_v5 }
 0x897   :  { %v2027_v45 = vpop.eup %2026 }
 0x898   :  { %715 = vrot.lane.b32.xlu1 %v2027_v45, %s2089_s5  ;;  %v3493_v45 = vsel %vm2447_vm2, %v2513_v55, %v2509_v51  ;;  %v909_v51 = vld [vmem:[%s3475_s6 + $0x78] sm:$0xff]  ;;  %v907_v55 = vld [vmem:[%s3475_s6 + $0x68] sm:$0xff] }
 0x899   :  { %1098 = vmatpush.msra.mxu3 %v909_v51  ;;  %v890_v51 = vsel %vm79_vm10, %v2663_v34, %v2644_v15 }
 0x89b   :  { %1099 = vmatpush.msra.mxu3 %v907_v55  ;;  %v2991_v55 = vld [vmem:[%s3477_s9 + $0x8] sm:$0xff] }
 0x90a   :  { %v716_v39 = vpop.permute.xlu1 %715 }
 0x90b   :  { %v718_v10 = vmul.f32 %v716_v39, %v713_v38 }
 0x90d   :  { %v720_v62 = vadd.f32 %v719_v23, %v718_v10  ;;  %v917_v23 = vld [vmem:[%s3474_s7 + $0x38] sm:$0xff] }
 0x90e   :  { %1982 = vmatpush.msra.mxu2 %v917_v23  ;;  %996 = vmatpush.msrb.mxu1 %v917_v23  ;;  %v913_v10 = vld [vmem:[%s3474_s7 + $0x18] sm:$0xff] }
 0x90f   :  { %722 = vrot.lane.b32.xlu2 %v720_v62, %s2089_s5  ;;  %v2957_v23 = vld [vmem:[%s3477_s9 + $0x38] sm:$0xff] }
 0x969   :  { %v2682_v18 = vpop.permute.xlu2 %722 }
 0x96a   :  { %1921 = vmatmul.msk.f32.vlgmr.msra.gmra.mxu0 %vm118_vm0, %v2682_v18  ;;  %1922 = vmatmul.msk.f32.vlgmr.msra.gmra.mxu1 %vm118_vm0, %v2682_v18 }
 0x9e7   :  { %v743_v53 = vpop.f32.mrf.mxu0  ;;  %v763_v2 = vpop.f32.mrf.mxu1 }
 0x9e8   :  { %v766_v12 = vadd.f32 %v743_v53, %v257_v43  ;;  %v786_v48 = vadd.f32 %v2530_v9, %v763_v2  ;;  %v905_v53 = vld [vmem:[%s3475_s6 + $0x58] sm:$0xff] }
 0x9e9   :  { %1100 = vmatpush.msra.mxu3 %v905_v53  ;;  %v897_v2 = vld [vmem:[%s3475_s6 + $0x18] sm:$0xff] }
 0x9ea   :  { %v1923_v14 = vmul.f32 -1.442695, %v766_v12  ;;  %v2749_v12 = vld [vmem:[%s3476_s1 + $0x30] sm:$0xff] }
 0x9ec   :  { %2028 = vpow2.f32 %v1923_v14  ;;  %v916_v14 = vld [vmem:[%s3474_s7 + $0x30] sm:$0xff] }
 0x9ed   :  { %955 = vmatpush.msrb.mxu0 %v916_v14 }
 0x9f2   :  { %v2029_v40 = vpop.eup %2028 }
 0x9f3   :  { %v770_v46 = vadd.f32 1.0, %v2029_v40  ;;  %v908_v40 = vld [vmem:[%s3475_s6 + $0x70] sm:$0xff] }
 0x9f5   :  { %2030 = vrcp.f32 %v770_v46  ;;  %v782_v21 = vand.u32 2147483648, %v770_v46  ;;  %v780_v58 = vand.u32 2147483647, %v770_v46  ;;  %vm776_vm15 = vweird.f32 %v770_v46 }
 0x9f7   :  { %v783_v24 = vor.u32 1.1754944e-38, %v782_v21  ;;  %vm781_vm4 = vcmp.eq.f32.partialorder %v780_v58, 8.507059e+37  ;;  %v904_v21 = vld [vmem:[%s3475_s6 + $0x50] sm:$0xff]  ;;  %v902_v58 = vld [vmem:[%s3475_s6 + $0x40] sm:$0xff] }
 0x9fb   :  { %v2031_v17 = vpop.eup %2030 }
 0x9fc   :  { %v772_v19 = vmul.f32 %v2031_v17, %v770_v46  ;;  %vm777_vm14 = vweird.f32 %v2031_v17  ;;  %v903_v46 = vld [vmem:[%s3475_s6 + $0x48] sm:$0xff] }
 0x9fd   :  { %vm778_vm3 = vmor %vm776_vm15, %vm777_vm14  ;;  %1101 = vmatpush.msra.mxu3 %v903_v46  ;;  %v1131_v46 = vld [vmem:[%s3479_s8] sm:$0x3] }
 0x9fe   :  { %v773_v20 = vsub.f32 1.0, %v772_v19  ;;  %v906_v19 = vld [vmem:[%s3475_s6 + $0x60] sm:$0xff] }
 0xa00   :  { %v774_v22 = vmul.f32 %v2031_v17, %v773_v20  ;;  %v901_v20 = vld [vmem:[%s3475_s6 + $0x38] sm:$0xff] }
 0xa01   :  { %1102 = vmatpush.msra.mxu3 %v901_v20 }
 0xa02   :  { %v775_v8 = vadd.f32 %v2031_v17, %v774_v22  ;;  %v899_v22 = vld [vmem:[%s3475_s6 + $0x28] sm:$0xff] }
 0xa03   :  { %1103 = vmatpush.msra.mxu3 %v899_v22  ;;  %v3077_v22 = vperm.slane %v1131_v46, 1 }
 0xa04   :  { %v779_v25 = vsel %vm778_vm3, %v2031_v17, %v775_v8  ;;  %v914_v17 = vld [vmem:[%s3474_s7 + $0x20] sm:$0xff]  ;;  %v2786_v8 = vld [vmem:[%s3476_s1 + $0x38] sm:$0xff] }
 0xa05   :  { %v784_v27 = vsel %vm781_vm4, %v783_v24, %v779_v25  ;;  %956 = vmatpush.msrb.mxu0 %v914_v17  ;;  %v900_v24 = vld [vmem:[%s3475_s6 + $0x30] sm:$0xff]  ;;  %1104 = vmatpush.msra.mxu3 %v897_v2  ;;  %v898_v25 = vld [vmem:[%s3475_s6 + $0x20] sm:$0xff] }
 0xa06   :  { %v787_v43 = vmul.f32 %v786_v48, %v784_v27  ;;  %v790_v26 = vsub.f32 1.0, %v784_v27  ;;  %v796_v59 = vmul.f32 %v784_v27, %v720_v62  ;;  %v911_v62 = vld [vmem:[%s3474_s7 + $0x8] sm:$0xff]  ;;  %v896_v48 = vld [vmem:[%s3475_s6 + $0x10] sm:$0xff]  ;;  %v894_v27 = vld [vmem:[%s3475_s6] sm:$0xff] }
 0xa08   :  { %v788_v30 = vadd.f32 %v787_v43, %v3491_v29 }
 0xa0a   :  { %2032 = vtanh.f32 %v788_v30 }
 0xa10   :  { %v2033_v31 = vpop.eup %2032 }
 0xa11   :  { %792 = vrot.lane.b32.xlu0 %v2033_v31, %s2089_s5 }
 0xa83   :  { %v793_v32 = vpop.permute.xlu0 %792 }
 0xa84   :  { %v795_v3 = vmul.f32 %v793_v32, %v790_v26  ;;  %v895_v32 = vld [vmem:[%s3475_s6 + $0x8] sm:$0xff] }
 0xa85   :  { %1105 = vmatpush.msra.mxu3 %v895_v32 }
 0xa86   :  { %v2700_v6 = vadd.f32 %v796_v59, %v795_v3  ;;  %v912_v59 = vld [vmem:[%s3474_s7 + $0x10] sm:$0xff]  ;;  %v910_v3 = vld [vmem:[%s3474_s7] sm:$0xff] }
 0xa87   :  { %957 = vmatpush.msrb.mxu0 %v912_v59 }
 0xa88   :  { %799 = vrot.lane.b32.xlu1 %v2700_v6, %s2089_s5 }
 0xa89   :  { %958 = vmatpush.msrb.mxu0 %v910_v3 }
 0xafa   :  { %v2704_v35 = vpop.permute.xlu1 %799 }
 0xafb   :  { %1924 = vmatmul.msk.f32.vlgmr.msrb.gmra.mxu2 %vm118_vm0, %v2704_v35  ;;  %1925 = vmatmul.msk.f32.vlgmr.msrb.gmra.mxu3 %vm118_vm0, %v2704_v35 }
 0xb7e   :  { %v820_v49 = vpop.f32.mrf.mxu2  ;;  %v840_v44 = vpop.f32.mrf.mxu3 }
 0xb7f   :  { %v843_v36 = vadd.f32 %v820_v49, %v3492_v33  ;;  %v863_v50 = vadd.f32 %v2530_v9, %v840_v44  ;;  %v915_v9 = vld [vmem:[%s3474_s7 + $0x28] sm:$0xff]  ;;  %v2821_v49 = vld [vmem:[%s3477_s9 + $0x70] sm:$0xff] }
 0xb80   :  { %1983 = vmatpush.msra.mxu2 %v915_v9  ;;  %997 = vmatpush.msrb.mxu1 %v915_v9  ;;  %v89_v33 = vld [vmem:[%s3476_s1 + $0x8] sm:$0xff] }
 0xb81   :  { %v1926_v37 = vmul.f32 -1.442695, %v843_v36  ;;  %1197 = vmatpush.msra.mxu0 %v2821_v49  ;;  %v2833_v36 = vld [vmem:[%s3477_s9 + $0x60] sm:$0xff]  ;;  %v93_v44 = vld [vmem:[%s3476_s1 + $0x28] sm:$0xff] }
 0xb82   :  { %1984 = vmatpush.msra.mxu2 %v913_v10  ;;  %998 = vmatpush.msrb.mxu1 %v913_v10  ;;  %v2967_v9 = vld [vmem:[%s3477_s9 + $0x28] sm:$0xff]  ;;  %v2976_v10 = vld [vmem:[%s3477_s9 + $0x18] sm:$0xff] }
 0xb83   :  { %2034 = vpow2.f32 %v1926_v37  ;;  %1198 = vmatpush.msra.mxu0 %v2833_v36  ;;  %v90_v37 = vld [vmem:[%s3476_s1 + $0x10] sm:$0xff] }
 0xb84   :  { %1985 = vmatpush.msra.mxu2 %v911_v62  ;;  %999 = vmatpush.msrb.mxu1 %v911_v62 }
 0xb85   :  { %1941 = vmatmul.msk.f32.vlgmr.msra.gmra.mxu2 %vm918_vm9, %v2749_v12 }
 0xb86   :  { %1057 = vmatpush.msrb.mxu2 %v908_v40 }
 0xb88   :  { %1058 = vmatpush.msrb.mxu2 %v906_v19 }
 0xb89   :  { %v2035_v7 = vpop.eup %2034 }
 0xb8a   :  { %v847_v13 = vadd.f32 1.0, %v2035_v7  ;;  %1059 = vmatpush.msrb.mxu2 %v904_v21  ;;  %v2845_v7 = vld [vmem:[%s3477_s9 + $0x50] sm:$0xff]  ;;  %v3075_v21 = vperm.slane %v1131_v46, 0 }
 0xb8b   :  { %1199 = vmatpush.msra.mxu0 %v2845_v7 }
 0xb8c   :  { %2036 = vrcp.f32 %v847_v13  ;;  %v859_v47 = vand.u32 2147483648, %v847_v13  ;;  %v857_v56 = vand.u32 2147483647, %v847_v13  ;;  %vm853_vm6 = vweird.f32 %v847_v13  ;;  %1060 = vmatpush.msrb.mxu2 %v902_v58 }
 0xb8d   :  { %1942 = vmatmul.msk.f32.gmra.mxu2 %vm918_vm9, %v2786_v8 }
 0xb8e   :  { %v860_v11 = vor.u32 1.1754944e-38, %v859_v47  ;;  %vm858_vm8 = vcmp.eq.f32.partialorder %v857_v56, 8.507059e+37  ;;  %1061 = vmatpush.msrb.mxu2 %v900_v24  ;;  %v92_v47 = vld [vmem:[%s3476_s1 + $0x20] sm:$0xff]  ;;  %v883_v56 = vsel %vm79_vm10, %v2574_v0, %v2704_v35 }
 0xb90   :  { %1062 = vmatpush.msrb.mxu2 %v898_v25 }
 0xb92   :  { %v2037_v61 = vpop.eup %2036  ;;  %1063 = vmatpush.msrb.mxu2 %v896_v48 }
 0xb93   :  { %v849_v41 = vmul.f32 %v2037_v61, %v847_v13  ;;  %vm854_vm5 = vweird.f32 %v2037_v61  ;;  %v91_v13 = vld [vmem:[%s3476_s1 + $0x18] sm:$0xff] }
 0xb94   :  { %vm855_vm7 = vmor %vm853_vm6, %vm854_vm5  ;;  %1064 = vmatpush.msrb.mxu2 %v894_v27 }
 0xb95   :  { %v850_v63 = vsub.f32 1.0, %v849_v41 }
 0xb96   :  { %1274 = vmatpush.msra.mxu2 %v2821_v49 }
 0xb97   :  { %v851_v42 = vmul.f32 %v2037_v61, %v850_v63 }
 0xb98   :  { %1275 = vmatpush.msra.mxu2 %v2833_v36 }
 0xb99   :  { %v852_v52 = vadd.f32 %v2037_v61, %v851_v42  ;;  %v2878_v42 = vld [vmem:[%s3477_s9 + $0x30] sm:$0xff] }
 0xb9a   :  { %1276 = vmatpush.msra.mxu2 %v2845_v7 }
 0xb9b   :  { %v856_v16 = vsel %vm855_vm7, %v2037_v61, %v852_v52  ;;  %v2857_v61 = vld [vmem:[%s3477_s9 + $0x40] sm:$0xff] }
 0xb9c   :  { %v2716_v54 = vsel %vm858_vm8, %v860_v11, %v856_v16  ;;  %1200 = vmatpush.msra.mxu0 %v2857_v61  ;;  %1277 = vmatpush.msra.mxu2 %v2857_v61  ;;  %v2896_v52 = vld [vmem:[%s3477_s9 + $0x20] sm:$0xff]  ;;  %v2901_v11 = vld [vmem:[%s3477_s9 + $0x78] sm:$0xff]  ;;  %v886_v16 = vsel %vm79_vm10, %v2609_v60, %v2682_v18 }
 0xb9d   :  { %v864_v5 = vmul.f32 %v863_v50, %v2716_v54  ;;  %v867_v43 = vsub.f32 1.0, %v2716_v54  ;;  %v873_v30 = vmul.f32 %v2716_v54, %v2700_v6  ;;  %v88_v6 = vld [vmem:[%s3476_s1] sm:$0xff]  ;;  %1217 = vmatpush.msra.mxu1 %v2901_v11  ;;  %1294 = vmatpush.msrb.mxu3 %v2901_v11  ;;  %v2918_v50 = vld [vmem:[%s3477_s9 + $0x10] sm:$0xff]  ;;  %v2923_v54 = vld [vmem:[%s3477_s9 + $0x68] sm:$0xff] }
 0xb9e   :  { %1935 = vmatmul.msk.f32.vlgmr.msrb.gmra.mxu1 %vm918_vm9, %v88_v6  ;;  %1927 = vmatmul.msk.f32.vlgmr.msrb.gmra.mxu0 %vm918_vm9, %v88_v6 }
 0xb9f   :  { %v865_v38 = vadd.f32 %v864_v5, %v3493_v45  ;;  %1201 = vmatpush.msra.mxu0 %v2878_v42  ;;  %1278 = vmatpush.msra.mxu2 %v2878_v42  ;;  %v889_v5 = vsel %vm79_vm10, %v2644_v15, %v2663_v34  ;;  %v2940_v45 = vld [vmem:[%s3477_s9] sm:$0xff]  ;;  %v3494_v15 = vmov 0.0   ;;  %v891_v34 = vsel %vm79_vm10, %v2682_v18, %v2609_v60 }
 0xba0   :  { %1218 = vmatpush.msra.mxu1 %v2923_v54  ;;  %1295 = vmatpush.msrb.mxu3 %v2923_v54  ;;  %v892_v60 = vsel %vm79_vm10, %v2704_v35, %v2574_v0 }
 0xba1   :  { %2038 = vtanh.f32 %v865_v38  ;;  %1202 = vmatpush.msra.mxu0 %v2896_v52  ;;  %1279 = vmatpush.msra.mxu2 %v2896_v52  ;;  %v2945_v38 = vld [vmem:[%s3477_s9 + $0x58] sm:$0xff] }
 0xba2   :  { %1219 = vmatpush.msra.mxu1 %v2945_v38  ;;  %1296 = vmatpush.msrb.mxu3 %v2945_v38 }
 0xba3   :  { %1203 = vmatpush.msra.mxu0 %v2918_v50  ;;  %1280 = vmatpush.msra.mxu2 %v2918_v50 }
 0xba5   :  { %1204 = vmatpush.msra.mxu0 %v2940_v45  ;;  %1281 = vmatpush.msra.mxu2 %v2940_v45 }
 0xba6   :  { %1936 = vmatmul.msk.f32.gmra.mxu1 %vm918_vm9, %v89_v33  ;;  %1928 = vmatmul.msk.f32.gmra.mxu0 %vm918_vm9, %v89_v33 }
 0xba7   :  { %v2039_v39 = vpop.eup %2038  ;;  %1351 = vmatpush.msrb.mxu0 %v2821_v49 }
 0xba8   :  { %869 = vrot.lane.b32.xlu2 %v2039_v39, %s2089_s5  ;;  %v2950_v39 = vld [vmem:[%s3477_s9 + $0x48] sm:$0xff] }
 0xba9   :  { %1220 = vmatpush.msra.mxu1 %v2950_v39  ;;  %1297 = vmatpush.msrb.mxu3 %v2950_v39 }
 0xbaa   :  { %1352 = vmatpush.msrb.mxu0 %v2833_v36 }
 0xbab   :  { %1221 = vmatpush.msra.mxu1 %v2957_v23  ;;  %1298 = vmatpush.msrb.mxu3 %v2957_v23 }
 0xbac   :  { %1353 = vmatpush.msrb.mxu0 %v2845_v7 }
 0xbad   :  { %1222 = vmatpush.msra.mxu1 %v2967_v9  ;;  %1299 = vmatpush.msrb.mxu3 %v2967_v9 }
 0xbae   :  { %1937 = vmatmul.msk.f32.gmra.mxu1 %vm918_vm9, %v90_v37  ;;  %1929 = vmatmul.msk.f32.gmra.mxu0 %vm918_vm9, %v90_v37 }
 0xbaf   :  { %1223 = vmatpush.msra.mxu1 %v2976_v10  ;;  %1300 = vmatpush.msrb.mxu3 %v2976_v10 }
 0xbb0   :  { %1354 = vmatpush.msrb.mxu0 %v2857_v61 }
 0xbb1   :  { %1224 = vmatpush.msra.mxu1 %v2991_v55  ;;  %1301 = vmatpush.msrb.mxu3 %v2991_v55 }
 0xbb2   :  { %1355 = vmatpush.msrb.mxu0 %v2878_v42 }
 0xbb3   :  { %1371 = vmatpush.msrb.mxu1 %v2901_v11 }
 0xbb4   :  { %1356 = vmatpush.msrb.mxu0 %v2896_v52 }
 0xbb5   :  { %1372 = vmatpush.msrb.mxu1 %v2923_v54 }
 0xbb6   :  { %1938 = vmatmul.msk.f32.gmra.mxu1 %vm918_vm9, %v91_v13  ;;  %1930 = vmatmul.msk.f32.gmra.mxu0 %vm918_vm9, %v91_v13 }
 0xbb7   :  { %1373 = vmatpush.msrb.mxu1 %v2945_v38  ;;  %1357 = vmatpush.msrb.mxu0 %v2918_v50 }
 0xbb9   :  { %1374 = vmatpush.msrb.mxu1 %v2950_v39  ;;  %1358 = vmatpush.msrb.mxu0 %v2940_v45 }
 0xbbb   :  { %1375 = vmatpush.msrb.mxu1 %v2957_v23 }
 0xbbd   :  { %1376 = vmatpush.msrb.mxu1 %v2967_v9 }
 0xbbe   :  { %1939 = vmatmul.msk.f32.gmra.mxu1 %vm918_vm9, %v92_v47  ;;  %1931 = vmatmul.msk.f32.gmra.mxu0 %vm918_vm9, %v92_v47 }
 0xbbf   :  { %1377 = vmatpush.msrb.mxu1 %v2976_v10 }
 0xbc1   :  { %1378 = vmatpush.msrb.mxu1 %v2991_v55 }
 0xbc6   :  { %1940 = vmatmul.msk.f32.gmra.mxu1 %vm918_vm9, %v93_v44  ;;  %1932 = vmatmul.msk.f32.gmra.mxu0 %vm918_vm9, %v93_v44 }
 0xbce   :  { %1933 = vmatmul.msk.f32.gmra.mxu0 %vm918_vm9, %v2749_v12  ;;  %1225 = vmatmul.f32.vlgmr.msra.gmra.mxu1 %v3494_v15 }
 0xbcf   :  { %1525 = vmatpush.msra.mxu1 %v2901_v11 }
 0xbd1   :  { %1526 = vmatpush.msra.mxu1 %v2923_v54 }
 0xbd3   :  { %1527 = vmatpush.msra.mxu1 %v2945_v38 }
 0xbd5   :  { %1528 = vmatpush.msra.mxu1 %v2950_v39 }
 0xbd6   :  { %1934 = vmatmul.msk.f32.gmra.mxu0 %vm918_vm9, %v2786_v8 }
 0xbd7   :  { %1529 = vmatpush.msra.mxu1 %v2957_v23 }
 0xbd9   :  { %1530 = vmatpush.msra.mxu1 %v2967_v9 }
 0xbdb   :  { %1531 = vmatpush.msra.mxu1 %v2976_v10 }
 0xbdd   :  { %1532 = vmatpush.msra.mxu1 %v2991_v55 }
 0xbde   :  { %1205 = vmatmul.f32.vlgmr.msra.gmra.mxu0 %v3494_v15 }
 0xbdf   :  { %1505 = vmatpush.msra.mxu0 %v2821_v49 }
 0xbe1   :  { %1506 = vmatpush.msra.mxu0 %v2833_v36 }
 0xbe3   :  { %1507 = vmatpush.msra.mxu0 %v2845_v7 }
 0xbe5   :  { %1508 = vmatpush.msra.mxu0 %v2857_v61 }
 0xbe7   :  { %1509 = vmatpush.msra.mxu0 %v2878_v42 }
 0xbe9   :  { %1510 = vmatpush.msra.mxu0 %v2896_v52 }
 0xbeb   :  { %1511 = vmatpush.msra.mxu0 %v2918_v50 }
 0xbed   :  { %1512 = vmatpush.msra.mxu0 %v2940_v45 }
 0xc02   :  { %v870_v29 = vpop.permute.xlu2 %869 }
 0xc03   :  { %v872_v31 = vmul.f32 %v870_v29, %v867_v43 }
 0xc05   :  { %v874_v26 = vadd.f32 %v873_v30, %v872_v31 }
 0xc07   :  { %877 = vrot.lane.b32.xlu0 %v874_v26, %s2089_s5 }
 0xc1b   :  { %v3062_v57 = vpop.f32.mrf.mxu0  ;;  %v3064_v18 = vpop.f32.mrf.mxu1 }
 0xc23   :  { %v963_v35 = vpop.f32.mrf.mxu0  ;;  %v1004_v53 = vpop.f32.mrf.mxu1 }
 0xc2b   :  { %v966_v12 = vpop.f32.mrf.mxu0  ;;  %v1007_v17 = vpop.f32.mrf.mxu1 }
 0xc33   :  { %v969_v8 = vpop.f32.mrf.mxu0  ;;  %v1010_v30 = vpop.f32.mrf.mxu1 }
 0xc3b   :  { %v972_v32 = vpop.f32.mrf.mxu0 }
 0xc79   :  { %v2864_v41 = vpop.permute.xlu0 %877 }
 0xc7a   :  { %v880_v63 = vsel %vm79_vm10, %v2539_v28, %v2864_v41  ;;  %v893_v0 = vsel %vm79_vm10, %v2864_v41, %v2539_v28  ;;  %v1019_v28 = vpop.f32.mrf.mxu2  ;;  %v1013_v41 = vpop.f32.mrf.mxu1 }
 0xc7b   :  { %1943 = vmatmul.msk.f32.vlgmr.msrb.gmra.mxu2 %vm118_vm0, %v880_v63  ;;  %1951 = vmatmul.msk.f32.vlgmr.msra.gmra.mxu3 %vm118_vm0, %v880_v63  ;;  %v975_v63 = vpop.f32.mrf.mxu0 }
 0xc7c   :  { %1428 = vmatpush.msrb.mxu2 %v2821_v49  ;;  %1448 = vmatpush.msra.mxu3 %v2901_v11 }
 0xc7e   :  { %1429 = vmatpush.msrb.mxu2 %v2833_v36  ;;  %1449 = vmatpush.msra.mxu3 %v2923_v54 }
 0xc80   :  { %1430 = vmatpush.msrb.mxu2 %v2845_v7  ;;  %1450 = vmatpush.msra.mxu3 %v2945_v38 }
 0xc82   :  { %1431 = vmatpush.msrb.mxu2 %v2857_v61  ;;  %1451 = vmatpush.msra.mxu3 %v2950_v39  ;;  %v3066_v62 = vpop.f32.mrf.mxu2 }
 0xc83   :  { %1944 = vmatmul.msk.f32.gmra.mxu2 %vm118_vm0, %v883_v56  ;;  %1952 = vmatmul.msk.f32.gmra.mxu3 %vm118_vm0, %v883_v56 }
 0xc84   :  { %1432 = vmatpush.msrb.mxu2 %v2878_v42  ;;  %1452 = vmatpush.msra.mxu3 %v2957_v23 }
 0xc86   :  { %1433 = vmatpush.msrb.mxu2 %v2896_v52  ;;  %1453 = vmatpush.msra.mxu3 %v2967_v9 }
 0xc88   :  { %1434 = vmatpush.msrb.mxu2 %v2918_v50  ;;  %1454 = vmatpush.msra.mxu3 %v2976_v10 }
 0xc8a   :  { %1435 = vmatpush.msrb.mxu2 %v2940_v45  ;;  %1455 = vmatpush.msra.mxu3 %v2991_v55 }
 0xc8b   :  { %1945 = vmatmul.msk.f32.gmra.mxu2 %vm118_vm0, %v886_v16  ;;  %1953 = vmatmul.msk.f32.gmra.mxu3 %vm118_vm0, %v886_v16 }
 0xc93   :  { %1946 = vmatmul.msk.f32.gmra.mxu2 %vm118_vm0, %v889_v5  ;;  %1954 = vmatmul.msk.f32.gmra.mxu3 %vm118_vm0, %v889_v5 }
 0xc9b   :  { %1947 = vmatmul.msk.f32.gmra.mxu2 %vm118_vm0, %v890_v51  ;;  %1955 = vmatmul.msk.f32.gmra.mxu3 %vm118_vm0, %v890_v51 }
 0xca3   :  { %1948 = vmatmul.msk.f32.gmra.mxu2 %vm118_vm0, %v891_v34  ;;  %1956 = vmatmul.msk.f32.gmra.mxu3 %vm118_vm0, %v891_v34 }
 0xcab   :  { %1949 = vmatmul.msk.f32.gmra.mxu2 %vm118_vm0, %v892_v60  ;;  %1957 = vmatmul.msk.f32.gmra.mxu3 %vm118_vm0, %v892_v60 }
 0xcb3   :  { %1950 = vmatmul.msk.f32.gmra.mxu2 %vm118_vm0, %v893_v0  ;;  %1958 = vmatmul.msk.f32.gmra.mxu3 %vm118_vm0, %v893_v0 }
 0xcfe   :  { %v3068_v14 = vpop.f32.mrf.mxu2  ;;  %v3070_v40 = vpop.f32.mrf.mxu3 }
 0xd06   :  { %v1069_v19 = vpop.f32.mrf.mxu2  ;;  %v1110_v20 = vpop.f32.mrf.mxu3 }
 0xd07   :  { %v1070_v58 = vadd.f32 %v1069_v19, %v963_v35  ;;  %v1111_v2 = vadd.f32 %v1110_v20, %v1004_v53  ;;  %v1016_v35 = vpop.f32.mrf.mxu1  ;;  %v978_v53 = vpop.f32.mrf.mxu0 }
 0xd09   :  { %v3080_v24 = vadd.f32 %v3075_v21, %v1070_v58  ;;  %v3083_v25 = vadd.f32 %v3077_v22, %v1111_v2 }
 0xd0e   :  { %v1072_v48 = vpop.f32.mrf.mxu2  ;;  %v1113_v27 = vpop.f32.mrf.mxu3 }
 0xd0f   :  { %v1073_v43 = vadd.f32 %v1072_v48, %v966_v12  ;;  %v1114_v29 = vadd.f32 %v1113_v27, %v1007_v17 }
 0xd11   :  { %v3086_v31 = vadd.f32 %v3075_v21, %v1073_v43  ;;  %v3089_v26 = vadd.f32 %v3077_v22, %v1114_v29 }
 0xd16   :  { %v1075_v59 = vpop.f32.mrf.mxu2  ;;  %v1116_v3 = vpop.f32.mrf.mxu3 }
 0xd17   :  { %v1076_v6 = vadd.f32 %v1075_v59, %v969_v8  ;;  %v1117_v33 = vadd.f32 %v1116_v3, %v1010_v30  ;;  %v981_v59 = vpop.f32.mrf.mxu0 }
 0xd19   :  { %v3092_v37 = vadd.f32 %v3075_v21, %v1076_v6  ;;  %v3095_v13 = vadd.f32 %v3077_v22, %v1117_v33 }
 0xd1e   :  { %v1078_v47 = vpop.f32.mrf.mxu2  ;;  %v1119_v56 = vpop.f32.mrf.mxu3 }
 0xd1f   :  { %v1079_v44 = vadd.f32 %v1078_v47, %v972_v32  ;;  %v1120_v16 = vadd.f32 %v1119_v56, %v1013_v41  ;;  %v1067_v47 = vadd.f32 %v3068_v14, %v3062_v57  ;;  %v1108_v56 = vadd.f32 %v3070_v40, %v3064_v18  ;;  %v1206_v57 = vpop.f32.mrf.mxu0 }
 0xd21   :  { %v3098_v5 = vadd.f32 %v3075_v21, %v1079_v44  ;;  %v3101_v51 = vadd.f32 %v3077_v22, %v1120_v16 }
 0xd23   :  { %v1179_v15 = vsel %vm2439_vm1, %v3092_v37, %v3098_v5  ;;  %v1180_v34 = vsel %vm2447_vm2, %v3095_v13, %v3101_v51  ;;  %v1181_v60 = vsel %vm2439_vm1, %v3098_v5, %v3092_v37  ;;  %v1182_v0 = vsel %vm2447_vm2, %v3101_v51, %v3095_v13 }
 0xd26   :  { %v1081_v12 = vpop.f32.mrf.mxu2  ;;  %v1122_v46 = vpop.f32.mrf.mxu3 }
 0xd27   :  { %v1082_v17 = vadd.f32 %v1081_v12, %v975_v63  ;;  %v1123_v19 = vadd.f32 %v1122_v46, %v1016_v35  ;;  %v3169_v12 = vadd.f32 %v3075_v21, %v1067_v47  ;;  %v3172_v46 = vadd.f32 %v3077_v22, %v1108_v56  ;;  %v1226_v47 = vpop.f32.mrf.mxu1 }
 0xd29   :  { %v3120_v20 = vadd.f32 %v3075_v21, %v1082_v17  ;;  %v3123_v58 = vadd.f32 %v3077_v22, %v1123_v19 }
 0xd2b   :  { %v1177_v2 = vsel %vm2439_vm1, %v3086_v31, %v3120_v20  ;;  %v1178_v8 = vsel %vm2447_vm2, %v3089_v26, %v3123_v58  ;;  %v1183_v48 = vsel %vm2439_vm1, %v3120_v20, %v3086_v31  ;;  %v1184_v27 = vsel %vm2447_vm2, %v3123_v58, %v3089_v26 }
 0xd2e   :  { %v1084_v43 = vpop.f32.mrf.mxu2  ;;  %v1125_v29 = vpop.f32.mrf.mxu3 }
 0xd2f   :  { %v1085_v30 = vadd.f32 %v1084_v43, %v978_v53  ;;  %v1126_v32 = vadd.f32 %v1125_v29, %v1019_v28 }
 0xd31   :  { %v3142_v3 = vadd.f32 %v3075_v21, %v1085_v30  ;;  %v3145_v6 = vadd.f32 %v3077_v22, %v1126_v32  ;;  %v3195_v32 = vld [vmem:[%s3478_s10] ss:$0 sm:$0xff] }
 0xd33   :  { %v1175_v33 = vsel %vm2439_vm1, %v3080_v24, %v3142_v3  ;;  %v1176_v41 = vsel %vm2447_vm2, %v3083_v25, %v3145_v6  ;;  %v1185_v28 = vsel %vm2439_vm1, %v3142_v3, %v3080_v24  ;;  %v1186_v63 = vsel %vm2447_vm2, %v3145_v6, %v3083_v25 }
 0xd36   :  { %v1087_v44 = vpop.f32.mrf.mxu2  ;;  %v1128_v16 = vpop.f32.mrf.mxu3 }
 0xd37   :  { %v1088_v35 = vadd.f32 %v1087_v44, %v981_v59  ;;  %v1129_v53 = vadd.f32 %v1128_v16, %v3066_v62 }
 0xd39   :  { %v3175_v17 = vadd.f32 %v3075_v21, %v1088_v35  ;;  %v3178_v19 = vadd.f32 %v3077_v22, %v1129_v53  ;;  %v1249_v53 = vadd.f32 %v3195_v32, %v1226_v47 }
 0xd3b   :  { %v1173_v18 = vsel %vm2439_vm1, %v3169_v12, %v3175_v17  ;;  %v3495_v25 = vsel %vm2439_vm1, %v3175_v17, %v3169_v12 }
 0xd3c   :  { %v1229_v40 = vadd.f32 %v1206_v57, %v1173_v18 }
 0xd3e   :  { %v1959_v21 = vmul.f32 -1.442695, %v1229_v40 }
 0xd40   :  { %2040 = vpow2.f32 %v1959_v21 }
 0xd46   :  { %v2041_v22 = vpop.eup %2040 }
 0xd47   :  { %v1233_v43 = vadd.f32 1.0, %v2041_v22  ;;  %v1174_v22 = vsel %vm2447_vm2, %v3172_v46, %v3178_v19 }
 0xd49   :  { %2042 = vrcp.f32 %v1233_v43  ;;  %v1245_v56 = vand.u32 2147483648, %v1233_v43  ;;  %v1243_v16 = vand.u32 2147483647, %v1233_v43  ;;  %vm1239_vm12 = vweird.f32 %v1233_v43 }
 0xd4b   :  { %v1246_v57 = vor.u32 1.1754944e-38, %v1245_v56  ;;  %vm1244_vm14 = vcmp.eq.f32.partialorder %v1243_v16, 8.507059e+37 }
 0xd4f   :  { %v2043_v29 = vpop.eup %2042 }
 0xd50   :  { %v1235_v30 = vmul.f32 %v2043_v29, %v1233_v43  ;;  %vm1240_vm11 = vweird.f32 %v2043_v29 }
 0xd51   :  { %vm1241_vm13 = vmor %vm1239_vm12, %vm1240_vm11 }
 0xd52   :  { %v1236_v59 = vsub.f32 1.0, %v1235_v30 }
 0xd54   :  { %v1237_v44 = vmul.f32 %v2043_v29, %v1236_v59 }
 0xd56   :  { %v1238_v35 = vadd.f32 %v2043_v29, %v1237_v44 }
 0xd58   :  { %v1242_v18 = vsel %vm1241_vm13, %v2043_v29, %v1238_v35 }
 0xd59   :  { %v1247_v40 = vsel %vm1244_vm14, %v1246_v57, %v1242_v18 }
 0xd5a   :  { %v1250_v21 = vmul.f32 %v1249_v53, %v1247_v40  ;;  %v1253_v44 = vsub.f32 1.0, %v1247_v40  ;;  %v1259_v14 = vmul.f32 0.0, %v1247_v40 }
 0xd5c   :  { %v1251_v30 = vadd.f32 %v1250_v21, %v1174_v22 }
 0xd5e   :  { %2044 = vtanh.f32 %v1251_v30 }
 0xd64   :  { %v2045_v59 = vpop.eup %2044 }
 0xd65   :  { %1255 = vrot.lane.b32.xlu1 %v2045_v59, %s2089_s5 }
 0xdd7   :  { %v1256_v43 = vpop.permute.xlu1 %1255 }
 0xdd8   :  { %v1258_v47 = vmul.f32 %v1256_v43, %v1253_v44 }
 0xdda   :  { %v3203_v62 = vadd.f32 %v1259_v14, %v1258_v47 }
 0xddc   :  { %1262 = vrot.lane.b32.xlu2 %v3203_v62, %s2089_s5 }
 0xe36   :  { %v1263_v29 = vpop.permute.xlu2 %1262 }
 0xe37   :  { %1960 = vmatmul.msk.f32.vlgmr.msra.gmra.mxu2 %vm118_vm0, %v1263_v29  ;;  %1961 = vmatmul.msk.f32.vlgmr.msrb.gmra.mxu3 %vm118_vm0, %v1263_v29 }
 0xe38   :  { %1582 = vmatpush.msra.mxu2 %v2821_v49  ;;  %1602 = vmatpush.msrb.mxu3 %v2901_v11 }
 0xe3a   :  { %1583 = vmatpush.msra.mxu2 %v2833_v36  ;;  %1603 = vmatpush.msrb.mxu3 %v2923_v54 }
 0xe3c   :  { %1584 = vmatpush.msra.mxu2 %v2845_v7  ;;  %1604 = vmatpush.msrb.mxu3 %v2945_v38 }
 0xe3e   :  { %1585 = vmatpush.msra.mxu2 %v2857_v61  ;;  %1605 = vmatpush.msrb.mxu3 %v2950_v39 }
 0xe40   :  { %1586 = vmatpush.msra.mxu2 %v2878_v42  ;;  %1606 = vmatpush.msrb.mxu3 %v2957_v23 }
 0xe42   :  { %1587 = vmatpush.msra.mxu2 %v2896_v52  ;;  %1607 = vmatpush.msrb.mxu3 %v2967_v9 }
 0xe44   :  { %1588 = vmatpush.msra.mxu2 %v2918_v50  ;;  %1608 = vmatpush.msrb.mxu3 %v2976_v10 }
 0xe46   :  { %1589 = vmatpush.msra.mxu2 %v2940_v45  ;;  %1609 = vmatpush.msrb.mxu3 %v2991_v55 }
 0xeba   :  { %v1283_v14 = vpop.f32.mrf.mxu2  ;;  %v1303_v59 = vpop.f32.mrf.mxu3 }
 0xebb   :  { %v1306_v56 = vadd.f32 %v1283_v14, %v1175_v33  ;;  %v1326_v33 = vadd.f32 %v3195_v32, %v1303_v59 }
 0xebd   :  { %v1962_v16 = vmul.f32 -1.442695, %v1306_v56 }
 0xebf   :  { %2046 = vpow2.f32 %v1962_v16 }
 0xec5   :  { %v2047_v35 = vpop.eup %2046 }
 0xec6   :  { %v1310_v53 = vadd.f32 1.0, %v2047_v35 }
 0xec8   :  { %2048 = vrcp.f32 %v1310_v53  ;;  %v1322_v21 = vand.u32 2147483648, %v1310_v53  ;;  %v1320_v30 = vand.u32 2147483647, %v1310_v53  ;;  %vm1316_vm3 = vweird.f32 %v1310_v53 }
 0xeca   :  { %v1323_v43 = vor.u32 1.1754944e-38, %v1322_v21  ;;  %vm1321_vm5 = vcmp.eq.f32.partialorder %v1320_v30, 8.507059e+37 }
 0xece   :  { %v2049_v57 = vpop.eup %2048 }
 0xecf   :  { %v1312_v18 = vmul.f32 %v2049_v57, %v1310_v53  ;;  %vm1317_vm15 = vweird.f32 %v2049_v57 }
 0xed0   :  { %vm1318_vm4 = vmor %vm1316_vm3, %vm1317_vm15 }
 0xed1   :  { %v1313_v40 = vsub.f32 1.0, %v1312_v18 }
 0xed3   :  { %v1314_v22 = vmul.f32 %v2049_v57, %v1313_v40 }
 0xed5   :  { %v1315_v44 = vadd.f32 %v2049_v57, %v1314_v22 }
 0xed7   :  { %v1319_v47 = vsel %vm1318_vm4, %v2049_v57, %v1315_v44 }
 0xed8   :  { %v1324_v29 = vsel %vm1321_vm5, %v1323_v43, %v1319_v47 }
 0xed9   :  { %v1327_v14 = vmul.f32 %v1326_v33, %v1324_v29  ;;  %v1330_v35 = vsub.f32 1.0, %v1324_v29  ;;  %v1336_v18 = vmul.f32 %v1324_v29, %v3203_v62 }
 0xedb   :  { %v1328_v56 = vadd.f32 %v1327_v14, %v1176_v41 }
 0xedd   :  { %2050 = vtanh.f32 %v1328_v56 }
 0xee3   :  { %v2051_v16 = vpop.eup %2050 }
 0xee4   :  { %1332 = vrot.lane.b32.xlu0 %v2051_v16, %s2089_s5 }
 0xf56   :  { %v1333_v53 = vpop.permute.xlu0 %1332 }
 0xf57   :  { %v1335_v57 = vmul.f32 %v1333_v53, %v1330_v35 }
 0xf59   :  { %v3238_v40 = vadd.f32 %v1336_v18, %v1335_v57 }
 0xf5b   :  { %1339 = vrot.lane.b32.xlu1 %v3238_v40, %s2089_s5 }
 0xfcd   :  { %v1340_v21 = vpop.permute.xlu1 %1339 }
 0xfce   :  { %1963 = vmatmul.msk.f32.vlgmr.msrb.gmra.mxu0 %vm118_vm0, %v1340_v21  ;;  %1964 = vmatmul.msk.f32.vlgmr.msrb.gmra.mxu1 %vm118_vm0, %v1340_v21 }
 0xfcf   :  { %1659 = vmatpush.msrb.mxu0 %v2821_v49  ;;  %1679 = vmatpush.msrb.mxu1 %v2901_v11 }
 0xfd1   :  { %1660 = vmatpush.msrb.mxu0 %v2833_v36  ;;  %1680 = vmatpush.msrb.mxu1 %v2923_v54 }
 0xfd3   :  { %1661 = vmatpush.msrb.mxu0 %v2845_v7  ;;  %1681 = vmatpush.msrb.mxu1 %v2945_v38 }
 0xfd5   :  { %1662 = vmatpush.msrb.mxu0 %v2857_v61  ;;  %1682 = vmatpush.msrb.mxu1 %v2950_v39 }
 0xfd7   :  { %1663 = vmatpush.msrb.mxu0 %v2878_v42  ;;  %1683 = vmatpush.msrb.mxu1 %v2957_v23 }
 0xfd9   :  { %1664 = vmatpush.msrb.mxu0 %v2896_v52  ;;  %1684 = vmatpush.msrb.mxu1 %v2967_v9 }
 0xfdb   :  { %1665 = vmatpush.msrb.mxu0 %v2918_v50  ;;  %1685 = vmatpush.msrb.mxu1 %v2976_v10 }
 0xfdd   :  { %1666 = vmatpush.msrb.mxu0 %v2940_v45  ;;  %1686 = vmatpush.msrb.mxu1 %v2991_v55 }
0x104b   :  { %v1360_v41 = vpop.f32.mrf.mxu0  ;;  %v1380_v16 = vpop.f32.mrf.mxu1 }
0x104c   :  { %v1383_v22 = vadd.f32 %v1360_v41, %v1177_v2  ;;  %v1403_v2 = vadd.f32 %v3195_v32, %v1380_v16 }
0x104e   :  { %v1965_v30 = vmul.f32 -1.442695, %v1383_v22 }
0x1050   :  { %2052 = vpow2.f32 %v1965_v30 }
0x1056   :  { %v2053_v59 = vpop.eup %2052 }
0x1057   :  { %v1387_v44 = vadd.f32 1.0, %v2053_v59 }
0x1059   :  { %2054 = vrcp.f32 %v1387_v44  ;;  %v1399_v29 = vand.u32 2147483648, %v1387_v44  ;;  %v1397_v56 = vand.u32 2147483647, %v1387_v44  ;;  %vm1393_vm7 = vweird.f32 %v1387_v44 }
0x105b   :  { %v1400_v53 = vor.u32 1.1754944e-38, %v1399_v29  ;;  %vm1398_vm9 = vcmp.eq.f32.partialorder %v1397_v56, 8.507059e+37 }
0x105f   :  { %v2055_v43 = vpop.eup %2054 }
0x1060   :  { %v1389_v47 = vmul.f32 %v2055_v43, %v1387_v44  ;;  %vm1394_vm6 = vweird.f32 %v2055_v43 }
0x1061   :  { %vm1395_vm8 = vmor %vm1393_vm7, %vm1394_vm6 }
0x1062   :  { %v1390_v33 = vsub.f32 1.0, %v1389_v47 }
0x1064   :  { %v1391_v14 = vmul.f32 %v2055_v43, %v1390_v33 }
0x1066   :  { %v1392_v35 = vadd.f32 %v2055_v43, %v1391_v14 }
0x1068   :  { %v1396_v18 = vsel %vm1395_vm8, %v2055_v43, %v1392_v35 }
0x1069   :  { %v1401_v57 = vsel %vm1398_vm9, %v1400_v53, %v1396_v18 }
0x106a   :  { %v1404_v21 = vmul.f32 %v1403_v2, %v1401_v57  ;;  %v1407_v30 = vsub.f32 1.0, %v1401_v57  ;;  %v1413_v44 = vmul.f32 %v1401_v57, %v3238_v40 }
0x106c   :  { %v1405_v41 = vadd.f32 %v1404_v21, %v1178_v8 }
0x106e   :  { %2056 = vtanh.f32 %v1405_v41 }
0x1074   :  { %v2057_v22 = vpop.eup %2056 }
0x1075   :  { %1409 = vrot.lane.b32.xlu2 %v2057_v22, %s2089_s5 }
0x10cf   :  { %v1410_v59 = vpop.permute.xlu2 %1409 }
0x10d0   :  { %v1412_v43 = vmul.f32 %v1410_v59, %v1407_v30 }
0x10d2   :  { %v3273_v47 = vadd.f32 %v1413_v44, %v1412_v43 }
0x10d4   :  { %1416 = vrot.lane.b32.xlu0 %v3273_v47, %s2089_s5 }
0x1146   :  { %v1417_v33 = vpop.permute.xlu0 %1416 }
0x1147   :  { %1966 = vmatmul.msk.f32.vlgmr.msrb.gmra.mxu2 %vm118_vm0, %v1417_v33  ;;  %1967 = vmatmul.msk.f32.vlgmr.msra.gmra.mxu3 %vm118_vm0, %v1417_v33 }
0x1148   :  { %1736 = vmatpush.msrb.mxu2 %v2821_v49  ;;  %1756 = vmatpush.msra.mxu3 %v2901_v11 }
0x114a   :  { %1737 = vmatpush.msrb.mxu2 %v2833_v36  ;;  %1757 = vmatpush.msra.mxu3 %v2923_v54 }
0x114c   :  { %1738 = vmatpush.msrb.mxu2 %v2845_v7  ;;  %1758 = vmatpush.msra.mxu3 %v2945_v38 }
0x114e   :  { %1739 = vmatpush.msrb.mxu2 %v2857_v61  ;;  %1759 = vmatpush.msra.mxu3 %v2950_v39 }
0x1150   :  { %1740 = vmatpush.msrb.mxu2 %v2878_v42  ;;  %1760 = vmatpush.msra.mxu3 %v2957_v23 }
0x1152   :  { %1741 = vmatpush.msrb.mxu2 %v2896_v52  ;;  %1761 = vmatpush.msra.mxu3 %v2967_v9 }
0x1154   :  { %1742 = vmatpush.msrb.mxu2 %v2918_v50  ;;  %1762 = vmatpush.msra.mxu3 %v2976_v10 }
0x1156   :  { %1743 = vmatpush.msrb.mxu2 %v2940_v45  ;;  %1763 = vmatpush.msra.mxu3 %v2991_v55 }
0x11ca   :  { %v1437_v49 = vpop.f32.mrf.mxu2  ;;  %v1457_v39 = vpop.f32.mrf.mxu3 }
0x11cb   :  { %v1460_v36 = vadd.f32 %v1437_v49, %v1179_v15  ;;  %v1480_v55 = vadd.f32 %v3195_v32, %v1457_v39 }
0x11cd   :  { %v1968_v7 = vmul.f32 -1.442695, %v1460_v36 }
0x11cf   :  { %2058 = vpow2.f32 %v1968_v7 }
0x11d5   :  { %v2059_v61 = vpop.eup %2058 }
0x11d6   :  { %v1464_v42 = vadd.f32 1.0, %v2059_v61 }
0x11d8   :  { %2060 = vrcp.f32 %v1464_v42  ;;  %v1476_v54 = vand.u32 2147483648, %v1464_v42  ;;  %v1474_v45 = vand.u32 2147483647, %v1464_v42  ;;  %vm1470_vm11 = vweird.f32 %v1464_v42 }
0x11da   :  { %v1477_v9 = vor.u32 1.1754944e-38, %v1476_v54  ;;  %vm1475_vm13 = vcmp.eq.f32.partialorder %v1474_v45, 8.507059e+37 }
0x11de   :  { %v2061_v52 = vpop.eup %2060 }
0x11df   :  { %v1466_v11 = vmul.f32 %v2061_v52, %v1464_v42  ;;  %vm1471_vm10 = vweird.f32 %v2061_v52 }
0x11e0   :  { %vm1472_vm12 = vmor %vm1470_vm11, %vm1471_vm10 }
0x11e1   :  { %v1467_v50 = vsub.f32 1.0, %v1466_v11 }
0x11e3   :  { %v1468_v38 = vmul.f32 %v2061_v52, %v1467_v50 }
0x11e5   :  { %v1469_v23 = vadd.f32 %v2061_v52, %v1468_v38 }
0x11e7   :  { %v1473_v10 = vsel %vm1472_vm12, %v2061_v52, %v1469_v23 }
0x11e8   :  { %v1478_v15 = vsel %vm1475_vm13, %v1477_v9, %v1473_v10 }
0x11e9   :  { %v1481_v8 = vmul.f32 %v1480_v55, %v1478_v15  ;;  %v1484_v56 = vsub.f32 1.0, %v1478_v15  ;;  %v1490_v35 = vmul.f32 %v1478_v15, %v3273_v47 }
0x11eb   :  { %v1482_v29 = vadd.f32 %v1481_v8, %v1180_v34 }
0x11ed   :  { %2062 = vtanh.f32 %v1482_v29 }
0x11f3   :  { %v2063_v14 = vpop.eup %2062 }
0x11f4   :  { %1486 = vrot.lane.b32.xlu1 %v2063_v14, %s2089_s5 }
0x1266   :  { %v1487_v16 = vpop.permute.xlu1 %1486 }
0x1267   :  { %v1489_v53 = vmul.f32 %v1487_v16, %v1484_v56 }
0x1269   :  { %v3308_v18 = vadd.f32 %v1490_v35, %v1489_v53 }
0x126b   :  { %1493 = vrot.lane.b32.xlu2 %v3308_v18, %s2089_s5 }
0x12c5   :  { %v1494_v2 = vpop.permute.xlu2 %1493 }
0x12c6   :  { %1969 = vmatmul.msk.f32.vlgmr.msra.gmra.mxu0 %vm118_vm0, %v1494_v2  ;;  %1970 = vmatmul.msk.f32.vlgmr.msra.gmra.mxu1 %vm118_vm0, %v1494_v2 }
0x1343   :  { %v1514_v34 = vpop.f32.mrf.mxu0  ;;  %v1534_v36 = vpop.f32.mrf.mxu1 }
0x1344   :  { %v1537_v57 = vadd.f32 %v1514_v34, %v1181_v60  ;;  %v1557_v37 = vadd.f32 %v3195_v32, %v1534_v36 }
0x1346   :  { %v1971_v21 = vmul.f32 -1.442695, %v1537_v57 }
0x1348   :  { %2064 = vpow2.f32 %v1971_v21 }
0x134e   :  { %v2065_v41 = vpop.eup %2064 }
0x134f   :  { %v1541_v22 = vadd.f32 1.0, %v2065_v41 }
0x1351   :  { %2066 = vrcp.f32 %v1541_v22  ;;  %v1553_v43 = vand.u32 2147483648, %v1541_v22  ;;  %v1551_v49 = vand.u32 2147483647, %v1541_v22  ;;  %vm1547_vm15 = vweird.f32 %v1541_v22 }
0x1353   :  { %v1554_v61 = vor.u32 1.1754944e-38, %v1553_v43  ;;  %vm1552_vm4 = vcmp.eq.f32.partialorder %v1551_v49, 8.507059e+37 }
0x1357   :  { %v2067_v30 = vpop.eup %2066 }
0x1358   :  { %v1543_v59 = vmul.f32 %v2067_v30, %v1541_v22  ;;  %vm1548_vm14 = vweird.f32 %v2067_v30 }
0x1359   :  { %vm1549_vm3 = vmor %vm1547_vm15, %vm1548_vm14 }
0x135a   :  { %v1544_v44 = vsub.f32 1.0, %v1543_v59 }
0x135c   :  { %v1545_v33 = vmul.f32 %v2067_v30, %v1544_v44 }
0x135e   :  { %v1546_v7 = vadd.f32 %v2067_v30, %v1545_v33 }
0x1360   :  { %v1550_v42 = vsel %vm1549_vm3, %v2067_v30, %v1546_v7 }
0x1361   :  { %v1555_v5 = vsel %vm1552_vm4, %v1554_v61, %v1550_v42 }
0x1362   :  { %v1558_v60 = vmul.f32 %v1557_v37, %v1555_v5  ;;  %v1561_v50 = vsub.f32 1.0, %v1555_v5  ;;  %v1567_v38 = vmul.f32 %v1555_v5, %v3308_v18 }
0x1364   :  { %v1559_v52 = vadd.f32 %v1558_v60, %v1182_v0 }
0x1366   :  { %2068 = vtanh.f32 %v1559_v52 }
0x136c   :  { %v2069_v11 = vpop.eup %2068 }
0x136d   :  { %1563 = vrot.lane.b32.xlu0 %v2069_v11, %s2089_s5 }
0x13df   :  { %v1564_v54 = vpop.permute.xlu0 %1563 }
0x13e0   :  { %v1566_v45 = vmul.f32 %v1564_v54, %v1561_v50 }
0x13e2   :  { %v3327_v39 = vadd.f32 %v1567_v38, %v1566_v45 }
0x13e4   :  { %1570 = vrot.lane.b32.xlu1 %v3327_v39, %s2089_s5 }
0x1456   :  { %v1571_v23 = vpop.permute.xlu1 %1570 }
0x1457   :  { %1972 = vmatmul.msk.f32.vlgmr.msra.gmra.mxu2 %vm118_vm0, %v1571_v23  ;;  %1973 = vmatmul.msk.f32.vlgmr.msrb.gmra.mxu3 %vm118_vm0, %v1571_v23 }
0x14da   :  { %v1591_v13 = vpop.f32.mrf.mxu2  ;;  %v1611_v16 = vpop.f32.mrf.mxu3 }
0x14db   :  { %v1614_v51 = vadd.f32 %v1591_v13, %v1183_v48  ;;  %v1634_v31 = vadd.f32 %v3195_v32, %v1611_v16 }
0x14dd   :  { %v1974_v0 = vmul.f32 -1.442695, %v1614_v51 }
0x14df   :  { %2070 = vpow2.f32 %v1974_v0 }
0x14e5   :  { %v2071_v9 = vpop.eup %2070 }
0x14e6   :  { %v1618_v10 = vadd.f32 1.0, %v2071_v9 }
0x14e8   :  { %2072 = vrcp.f32 %v1618_v10  ;;  %v1630_v29 = vand.u32 2147483648, %v1618_v10  ;;  %v1628_v56 = vand.u32 2147483647, %v1618_v10  ;;  %vm1624_vm6 = vweird.f32 %v1618_v10 }
0x14ea   :  { %v1631_v53 = vor.u32 1.1754944e-38, %v1630_v29  ;;  %vm1629_vm8 = vcmp.eq.f32.partialorder %v1628_v56, 8.507059e+37 }
0x14ee   :  { %v2073_v55 = vpop.eup %2072 }
0x14ef   :  { %v1620_v15 = vmul.f32 %v2073_v55, %v1618_v10  ;;  %vm1625_vm5 = vweird.f32 %v2073_v55 }
0x14f0   :  { %vm1626_vm7 = vmor %vm1624_vm6, %vm1625_vm5 }
0x14f1   :  { %v1621_v8 = vsub.f32 1.0, %v1620_v15 }
0x14f3   :  { %v1622_v14 = vmul.f32 %v2073_v55, %v1621_v8 }
0x14f5   :  { %v1623_v35 = vadd.f32 %v2073_v55, %v1622_v14 }
0x14f7   :  { %v1627_v2 = vsel %vm1626_vm7, %v2073_v55, %v1623_v35 }
0x14f8   :  { %v1632_v20 = vsel %vm1629_vm8, %v1631_v53, %v1627_v2 }
0x14f9   :  { %v1635_v48 = vmul.f32 %v1634_v31, %v1632_v20  ;;  %v1638_v21 = vsub.f32 1.0, %v1632_v20  ;;  %v1644_v22 = vmul.f32 %v1632_v20, %v3327_v39  ;;  %v3496_v20 = vsel %vm2447_vm2, %v3178_v19, %v3172_v46  ;;  %v1811_v46 = vld [vmem:[%s3480_s11 + $0x20] sm:$0xff]  ;;  %v1810_v19 = vld [vmem:[%s3480_s11 + $0x18] sm:$0xff] }
0x14fb   :  { %v1636_v34 = vadd.f32 %v1635_v48, %v1184_v27 }
0x14fd   :  { %2074 = vtanh.f32 %v1636_v34 }
0x1503   :  { %v2075_v57 = vpop.eup %2074 }
0x1504   :  { %1640 = vrot.lane.b32.xlu2 %v2075_v57, %s2089_s5  ;;  %v1814_v57 = vld [vmem:[%s3480_s11 + $0x38] sm:$0xff] }
0x1505   :  { %1832 = vmatpush.msra.mxu0 %v1814_v57 }
0x155e   :  { %v1641_v41 = vpop.permute.xlu2 %1640 }
0x155f   :  { %v1643_v30 = vmul.f32 %v1641_v41, %v1638_v21  ;;  %v1809_v21 = vld [vmem:[%s3480_s11 + $0x10] sm:$0xff]  ;;  %v1808_v41 = vld [vmem:[%s3480_s11 + $0x8] sm:$0xff] }
0x1561   :  { %v3346_v59 = vadd.f32 %v1644_v22, %v1643_v30  ;;  %v1807_v22 = vld [vmem:[%s3480_s11] sm:$0xff]  ;;  %v1800_v30 = vmax.f32 %v3203_v62, %v3238_v40  ;;  %v1859_v62 = vld [vmem:[%s3482_s13 + $0x78] sm:$0xff]  ;;  %v1858_v40 = vld [vmem:[%s3482_s13 + $0x70] sm:$0xff] }
0x1562   :  { %1864 = vmatpush.msra.mxu1 %v1859_v62 }
0x1563   :  { %1647 = vrot.lane.b32.xlu0 %v3346_v59, %s2089_s5 }
0x1564   :  { %1865 = vmatpush.msra.mxu1 %v1858_v40 }
0x15d5   :  { %v1648_v44 = vpop.permute.xlu0 %1647 }
0x15d6   :  { %1975 = vmatmul.msk.f32.vlgmr.msrb.gmra.mxu0 %vm118_vm0, %v1648_v44  ;;  %1976 = vmatmul.msk.f32.vlgmr.msrb.gmra.mxu1 %vm118_vm0, %v1648_v44  ;;  %v1801_v44 = vmax.f32 %v1800_v30, %v3273_v47  ;;  %v1857_v47 = vld [vmem:[%s3482_s13 + $0x68] sm:$0xff] }
0x15d7   :  { %1866 = vmatpush.msra.mxu1 %v1857_v47 }
0x1653   :  { %v1668_v26 = vpop.f32.mrf.mxu0  ;;  %v1688_v5 = vpop.f32.mrf.mxu1 }
0x1654   :  { %v1691_v58 = vadd.f32 %v1668_v26, %v1185_v28  ;;  %v1711_v24 = vadd.f32 %v3195_v32, %v1688_v5  ;;  %v1802_v26 = vmax.f32 %v1801_v44, %v3308_v18  ;;  %v1856_v18 = vld [vmem:[%s3482_s13 + $0x60] sm:$0xff] }
0x1655   :  { %1867 = vmatpush.msra.mxu1 %v1856_v18  ;;  %v1852_v5 = vld [vmem:[%s3482_s13 + $0x40] sm:$0xff] }
0x1656   :  { %v1977_v27 = vmul.f32 -1.442695, %v1691_v58  ;;  %v1803_v58 = vmax.f32 %v1802_v26, %v3327_v39  ;;  %v1855_v39 = vld [vmem:[%s3482_s13 + $0x58] sm:$0xff] }
0x1657   :  { %1868 = vmatpush.msra.mxu1 %v1855_v39 }
0x1658   :  { %2076 = vpow2.f32 %v1977_v27 }
0x165e   :  { %v2077_v43 = vpop.eup %2076 }
0x165f   :  { %v1695_v33 = vadd.f32 1.0, %v2077_v43 }
0x1661   :  { %2078 = vrcp.f32 %v1695_v33  ;;  %v1707_v61 = vand.u32 2147483648, %v1695_v33  ;;  %v1705_v37 = vand.u32 2147483647, %v1695_v33  ;;  %vm1701_vm10 = vweird.f32 %v1695_v33 }
0x1663   :  { %v1708_v52 = vor.u32 1.1754944e-38, %v1707_v61  ;;  %vm1706_vm12 = vcmp.eq.f32.partialorder %v1705_v37, 8.507059e+37  ;;  %v1853_v37 = vld [vmem:[%s3482_s13 + $0x48] sm:$0xff] }
0x1667   :  { %v2079_v49 = vpop.eup %2078 }
0x1668   :  { %v1697_v36 = vmul.f32 %v2079_v49, %v1695_v33  ;;  %vm1702_vm9 = vweird.f32 %v2079_v49  ;;  %v1804_v33 = vmax.f32 %v1803_v58, %v3346_v59 }
0x1669   :  { %vm1703_vm11 = vmor %vm1701_vm10, %vm1702_vm9 }
0x166a   :  { %v1698_v7 = vsub.f32 1.0, %v1697_v36 }
0x166c   :  { %v1699_v42 = vmul.f32 %v2079_v49, %v1698_v7 }
0x166e   :  { %v1700_v60 = vadd.f32 %v2079_v49, %v1699_v42 }
0x1670   :  { %v1704_v11 = vsel %vm1703_vm11, %v2079_v49, %v1700_v60  ;;  %v1851_v60 = vld [vmem:[%s3482_s13 + $0x38] sm:$0xff] }
0x1671   :  { %v1709_v3 = vsel %vm1706_vm12, %v1708_v52, %v1704_v11  ;;  %v1850_v52 = vld [vmem:[%s3482_s13 + $0x30] sm:$0xff]  ;;  %v1849_v11 = vld [vmem:[%s3482_s13 + $0x28] sm:$0xff] }
0x1672   :  { %v1712_v28 = vmul.f32 %v1711_v24, %v1709_v3  ;;  %v1715_v38 = vsub.f32 1.0, %v1709_v3  ;;  %v1721_v23 = vmul.f32 %v1709_v3, %v3346_v59  ;;  %v1854_v59 = vld [vmem:[%s3482_s13 + $0x50] sm:$0xff]  ;;  %v1848_v24 = vld [vmem:[%s3482_s13 + $0x20] sm:$0xff]  ;;  %v1847_v3 = vld [vmem:[%s3482_s13 + $0x18] sm:$0xff] }
0x1673   :  { %1869 = vmatpush.msra.mxu1 %v1854_v59 }
0x1674   :  { %v1713_v50 = vadd.f32 %v1712_v28, %v1186_v63  ;;  %v1846_v28 = vld [vmem:[%s3482_s13 + $0x10] sm:$0xff] }
0x1675   :  { %1870 = vmatpush.msra.mxu1 %v1853_v37 }
0x1676   :  { %2080 = vtanh.f32 %v1713_v50 }
0x1677   :  { %1871 = vmatpush.msra.mxu1 %v1852_v5 }
0x1679   :  { %1872 = vmatpush.msra.mxu1 %v1851_v60 }
0x167b   :  { %1873 = vmatpush.msra.mxu1 %v1850_v52 }
0x167c   :  { %v2081_v54 = vpop.eup %2080 }
0x167d   :  { %1717 = vrot.lane.b32.xlu1 %v2081_v54, %s2089_s5  ;;  %1874 = vmatpush.msra.mxu1 %v1849_v11  ;;  %v1845_v54 = vld [vmem:[%s3482_s13 + $0x8] sm:$0xff] }
0x167f   :  { %1875 = vmatpush.msra.mxu1 %v1848_v24 }
0x1681   :  { %1876 = vmatpush.msra.mxu1 %v1847_v3 }
0x1683   :  { %1877 = vmatpush.msra.mxu1 %v1846_v28 }
0x1685   :  { %1878 = vmatpush.msra.mxu1 %v1845_v54 }
0x16ef   :  { %v1718_v45 = vpop.permute.xlu1 %1717 }
0x16f0   :  { %v1720_v13 = vmul.f32 %v1718_v45, %v1715_v38  ;;  %v1844_v38 = vld [vmem:[%s3482_s13] sm:$0xff] }
0x16f1   :  { %1879 = vmatpush.msra.mxu1 %v1844_v38  ;;  %v1990_v45 = vld [vmem:[%s3481_s12] ss:$0 sm:$0xff] }
0x16f2   :  { %v1722_v51 = vadd.f32 %v1721_v23, %v1720_v13 }
0x16f4   :  { %1724 = vrot.lane.b32.xlu2 %v1722_v51, %s2089_s5  ;;  %v1805_v61 = vmax.f32 %v1804_v33, %v1722_v51 }
0x174e   :  { %v1725_v0 = vpop.permute.xlu2 %1724 }
0x174f   :  { %1978 = vmatmul.msk.f32.vlgmr.msrb.gmra.mxu2 %vm118_vm0, %v1725_v0  ;;  %1979 = vmatmul.msk.f32.vlgmr.msra.gmra.mxu3 %vm118_vm0, %v1725_v0 }
0x17d2   :  { %v1745_v9 = vpop.f32.mrf.mxu2  ;;  %v1765_v35 = vpop.f32.mrf.mxu3 }
0x17d3   :  { %v1768_v6 = vadd.f32 %v1745_v9, %v3495_v25  ;;  %v1788_v12 = vadd.f32 %v3195_v32, %v1765_v35  ;;  %v1813_v32 = vld [vmem:[%s3480_s11 + $0x30] sm:$0xff] }
0x17d4   :  { %1833 = vmatpush.msra.mxu0 %v1813_v32 }
0x17d5   :  { %v1980_v63 = vmul.f32 -1.442695, %v1768_v6 }
0x17d6   :  { %1834 = vmatpush.msra.mxu0 %v1812_v4 }
0x17d7   :  { %2082 = vpow2.f32 %v1980_v63 }
0x17d8   :  { %1835 = vmatpush.msra.mxu0 %v1811_v46 }
0x17da   :  { %1836 = vmatpush.msra.mxu0 %v1810_v19 }
0x17dc   :  { %1837 = vmatpush.msra.mxu0 %v1809_v21 }
0x17dd   :  { %v2083_v10 = vpop.eup %2082 }
0x17de   :  { %v1772_v55 = vadd.f32 1.0, %v2083_v10  ;;  %1838 = vmatpush.msra.mxu0 %v1808_v41 }
0x17e0   :  { %2084 = vrcp.f32 %v1772_v55  ;;  %v1784_v14 = vand.u32 2147483648, %v1772_v55  ;;  %v1782_v16 = vand.u32 2147483647, %v1772_v55  ;;  %vm1778_vm14 = vweird.f32 %v1772_v55  ;;  %1839 = vmatpush.msra.mxu0 %v1807_v22 }
0x17e2   :  { %v1785_v1 = vor.u32 1.1754944e-38, %v1784_v14  ;;  %vm1783_vm1 = vcmp.eq.f32.partialorder %v1782_v16, 8.507059e+37 }
0x17e6   :  { %v2085_v15 = vpop.eup %2084 }
0x17e7   :  { %v1774_v8 = vmul.f32 %v2085_v15, %v1772_v55  ;;  %vm1779_vm13 = vweird.f32 %v2085_v15 }
0x17e8   :  { %vm1780_vm15 = vmor %vm1778_vm14, %vm1779_vm13 }
0x17e9   :  { %v1775_v29 = vsub.f32 1.0, %v1774_v8 }
0x17eb   :  { %v1776_v56 = vmul.f32 %v2085_v15, %v1775_v29 }
0x17ed   :  { %v1777_v53 = vadd.f32 %v2085_v15, %v1776_v56 }
0x17ef   :  { %v1781_v2 = vsel %vm1780_vm15, %v2085_v15, %v1777_v53 }
0x17f0   :  { %v1786_v17 = vsel %vm1783_vm1, %v1785_v1, %v1781_v2 }
0x17f1   :  { %v1789_v31 = vmul.f32 %v1788_v12, %v1786_v17  ;;  %v1792_v27 = vsub.f32 1.0, %v1786_v17  ;;  %v1798_v49 = vmul.f32 %v1786_v17, %v1722_v51  ;;  %v1991_v51 = vld [vmem:[%s3483_s14] ss:$0 sm:$0xff] }
0x17f3   :  { %v1790_v48 = vadd.f32 %v1789_v31, %v3496_v20 }
0x17f5   :  { %2086 = vtanh.f32 %v1790_v48 }
0x17fb   :  { %v2087_v34 = vpop.eup %2086 }
0x17fc   :  { %1794 = vrot.lane.b32.xlu0 %v2087_v34, %s2089_s5 }
0x186e   :  { %v1795_v43 = vpop.permute.xlu0 %1794 }
0x186f   :  { %v1797_v36 = vmul.f32 %v1795_v43, %v1792_v27 }
0x1871   :  { %v1799_v7 = vadd.f32 %v1798_v49, %v1797_v36 }
0x1873   :  { %v1806_v42 = vmax.f32 %v1805_v61, %v1799_v7 }
0x1875   :  { %1820 = vrot.lane.b32.xlu1 %v1806_v42, %s2089_s5 }
0x18e7   :  { %v1821_v50 = vpop.permute.xlu1 %1820 }
0x18e8   :  { %1981 = vmatmul.msk.f32.vlgmr.msra.gmra.mxu0 %vm118_vm0, %v1821_v50 }
0x1965   :  { %v1841_v23 = vpop.f32.mrf.mxu0 }
0x1966   :  { %v1842_v13 = vadd.f32 %v1990_v45, %v1841_v23 }
0x1968   :  { %1880 = vmatmul.f32.vlgmr.msra.gmra.mxu1 %v1842_v13 }
0x19e5   :  { %v1881_v0 = vpop.f32.mrf.mxu1 }
0x19e6   :  { %v1882_v9 = vadd.f32 %v1991_v51, %v1881_v0 }
0x19e8   :  { %1884 = vst [vmem:[%s3484_s15] sm:$0xff] %v1882_v9 }

</bundles_post_ra>
